<compile_context>
chip_gen: v5e
topology: v5e:2x2
jax: 0.10.0
libtpu: 0.0.40
codegen_flags: <defaults>
</compile_context>

<pallas_src>
import numpy as np

import jax
import jax.numpy as jnp
from jax.experimental import pallas as pl
from jax.experimental.pallas import tpu as pltpu

BASE_WIDTH = 4
N_OUTPUT = 2
BN_EPS = 1e-5

_CONST_ORDER = ('pool_sel', 'c1_sel', 'c1_w', 'c1_off',
                'c2_sel', 'c2_w', 'c2_off',
                'w1c', 'b1', 'w2t', 'b2', 'w3t', 'b3')


# ----------------------------- fused Pallas kernel ---------------------------

def _maml_fused_kernel(x_ref, pool_sel_ref, c1_sel_ref, c1_w_ref, c1_off_ref,
                       c2_sel_ref, c2_w_ref, c2_off_ref,
                       w1c_ref, b1_ref, w2t_ref, b2_ref, w3t_ref, b3_ref, o_ref):
    f32 = jnp.float32
    x = x_ref[0]                                                    # (Cin, H*W) = (32, 256)

    # h_mp1: 2x2 max pool.  Spatial gather of the 4 window taps is done with
    # constant 0/1 selection matmuls (keeps access patterns lane-friendly).
    t0 = jnp.dot(x, pool_sel_ref[0], preferred_element_type=f32)    # (32, 64)
    t1 = jnp.dot(x, pool_sel_ref[1], preferred_element_type=f32)
    t2 = jnp.dot(x, pool_sel_ref[2], preferred_element_type=f32)
    t3 = jnp.dot(x, pool_sel_ref[3], preferred_element_type=f32)
    act = jnp.maximum(jnp.maximum(t0, t1), jnp.maximum(t2, t3))     # (32, 64)

    # h_conv1 + h_batch_norm1 + h_relu1  (direct conv: 9 taps, BN folded in).
    acc = None
    for t in range(9):
        g = jnp.dot(act, c1_sel_ref[t], preferred_element_type=f32)      # (32, 16)
        c = jnp.dot(c1_w_ref[t], g, preferred_element_type=f32)          # (8, 16)
        acc = c if acc is None else acc + c
    act = jnp.maximum(acc + c1_off_ref[...], 0.0)                        # (8, 16)

    # h_conv2 + h_batch_norm2 + h_relu2
    acc = None
    for t in range(9):
        g = jnp.dot(act, c2_sel_ref[t], preferred_element_type=f32)      # (8, 4)
        c = jnp.dot(c2_w_ref[t], g, preferred_element_type=f32)          # (4, 4)
        acc = c if acc is None else acc + c
    z = jnp.maximum(acc + c2_off_ref[...], 0.0)                          # (4, 4) [c, oh*2+ow]

    # h_flatten (PyTorch NCHW order is folded into w1c) + h_dropout(eval=id)
    # + h_linear1 + h_relu3
    h = None
    for c in range(z.shape[0]):
        v = jnp.dot(z[c:c + 1, :], w1c_ref[c], preferred_element_type=f32)  # (1, 128)
        h = v if h is None else h + v
    h = jnp.maximum(h + b1_ref[...], 0.0)                                   # (1, 128)

    # h_linear2 + h_relu4, h_linear3
    h = jnp.maximum(jnp.dot(h, w2t_ref[...], preferred_element_type=f32)
                    + b2_ref[...], 0.0)                                     # (1, 32)
    o_ref[0] = jnp.dot(h, w3t_ref[...], preferred_element_type=f32) + b3_ref[...]  # (1, 2)


# ----------------------------- one-time preprocessing -------------------------

def _pool_selectors(h, w):
    """(4, h*w, (h//2)*(w//2)) 0/1 gather matrices for the 2x2 pool taps."""
    ho, wo = h // 2, w // 2
    sel = np.zeros((4, h * w, ho * wo), np.float32)
    for t, (dh, dw) in enumerate(((0, 0), (0, 1), (1, 0), (1, 1))):
        for i in range(ho):
            for j in range(wo):
                sel[t, (2 * i + dh) * w + (2 * j + dw), i * wo + j] = 1.0
    return sel


def _conv_selectors(h, w):
    """(9, h*w, ho*wo) 0/1 gather matrices for 3x3 / stride-2 / pad-1 conv taps."""
    ho, wo = (h - 1) // 2 + 1, (w - 1) // 2 + 1
    sel = np.zeros((9, h * w, ho * wo), np.float32)
    for kh in range(3):
        for kw in range(3):
            t = kh * 3 + kw
            for i in range(ho):
                for j in range(wo):
                    ih, iw = 2 * i - 1 + kh, 2 * j - 1 + kw
                    if 0 <= ih < h and 0 <= iw < w:          # padding -> all-zero row
                        sel[t, ih * w + iw, i * wo + j] = 1.0
    return sel


def build_kernel_params(params, hw=16):
    """Fold BN, re-layout all weights, build gather matrices.  Called once."""
    kp = {}
    # folded conv+BN weights / offsets (eval-mode BatchNorm)
    for i, (wk, bk, bn) in enumerate((('w_c1', 'b_c1', 'bn1'),
                                      ('w_c2', 'b_c2', 'bn2')), 1):
        w, b = params[wk], params[bk]
        g = params[f'{bn}_g'] / jnp.sqrt(params[f'{bn}_v'] + BN_EPS)
        off = g * b + params[f'{bn}_b'] - params[f'{bn}_m'] * g
        cout, cin = w.shape[0], w.shape[1]
        wf = w * g[:, None, None, None]                                   # (Cout,Cin,3,3)
        kp[f'c{i}_w'] = jnp.transpose(wf, (2, 3, 0, 1)).reshape(9, cout, cin)
        kp[f'c{i}_off'] = off.reshape(cout, 1)

    # spatial gather matrices (constants)
    h_pool = hw // 2                                 # 16 -> 8
    h_c1 = (h_pool - 1) // 2 + 1                     # 8 -> 4
    kp['pool_sel'] = jnp.asarray(_pool_selectors(hw, hw))        # (4, 256, 64)
    kp['c1_sel'] = jnp.asarray(_conv_selectors(h_pool, h_pool))  # (9, 64, 16)
    kp['c2_sel'] = jnp.asarray(_conv_selectors(h_c1, h_c1))      # (9, 16, 4)

    # MLP weights: PyTorch (out, in) -> matmul-ready; NCHW flatten order folded into w1c
    c2 = params['w_c2'].shape[0]
    s2 = params['w_l1'].shape[1] // c2
    kp['w1c'] = jnp.transpose(params['w_l1'].reshape(-1, c2, s2), (1, 2, 0))  # (4, 4, 128)
    kp['b1'] = params['b_l1'].reshape(1, -1)
    kp['w2t'] = params['w_l2'].T
    kp['b2'] = params['b_l2'].reshape(1, -1)
    kp['w3t'] = params['w_l3'].T
    kp['b3'] = params['b_l3'].reshape(1, -1)
    return kp


# ----------------------------- forward ---------------------------------------

def maml_base_forward(x_nchw, kparams):
    # TODO(synk): the encoder is injected externally in the PyTorch module;
    #             identity encoder used here (input already has base_width*8 channels).
    N, C, H, W = x_nchw.shape
    n_out = kparams['w3t'].shape[1]
    x = x_nchw.astype(jnp.float32).reshape(N, C, H * W)          # free reshape of NCHW

    consts = [kparams[k] for k in _CONST_ORDER]
    in_specs = [pl.BlockSpec((1, C, H * W), lambda n: (n, 0, 0))]
    for a in consts:
        in_specs.append(pl.BlockSpec(a.shape, lambda n, _nd=a.ndim: (0,) * _nd))

    out = pl.pallas_call(
        _maml_fused_kernel,
        grid=(N,),
        out_shape=jax.ShapeDtypeStruct((N, 1, n_out), jnp.float32),
        in_specs=in_specs,
        out_specs=pl.BlockSpec((1, 1, n_out), lambda n: (n, 0, 0)),
        compiler_params=pltpu.CompilerParams(dimension_semantics=("parallel",)),
    )(x, *consts)
    return out.reshape(N, n_out)


# ----------------------------- reference (pure JAX) ---------------------------

def reference_forward(x, p):
    e = x.astype(jnp.float32)
    y = jax.lax.reduce_window(e, -jnp.inf, jax.lax.max,
                              (1, 1, 2, 2), (1, 1, 2, 2), 'VALID')

    def conv_bn_relu(y, w, b, g, be, m, v):
        y = jax.lax.conv_general_dilated(y, w, (2, 2), ((1, 1), (1, 1)),
                                         dimension_numbers=('NCHW', 'OIHW', 'NCHW'))
        y = y + b[None, :, None, None]
        y = ((y - m[None, :, None, None]) / jnp.sqrt(v[None, :, None, None] + BN_EPS)
             * g[None, :, None, None] + be[None, :, None, None])
        return jnp.maximum(y, 0.0)

    y = conv_bn_relu(y, p['w_c1'], p['b_c1'], p['bn1_g'], p['bn1_b'], p['bn1_m'], p['bn1_v'])
    y = conv_bn_relu(y, p['w_c2'], p['b_c2'], p['bn2_g'], p['bn2_b'], p['bn2_m'], p['bn2_v'])
    y = y.reshape(y.shape[0], -1)
    y = jnp.maximum(y @ p['w_l1'].T + p['b_l1'], 0.0)
    y = jnp.maximum(y @ p['w_l2'].T + p['b_l2'], 0.0)
    return y @ p['w_l3'].T + p['b_l3']


# ----------------------------- params -----------------------------------------

def init_params(key, base_width=BASE_WIDTH, n_output=N_OUTPUT):
    ks = jax.random.split(key, 10)
    c_in = base_width * 8
    c1 = base_width * 2
    c2 = base_width
    p = {}
    p['w_c1'] = 0.1 * jax.random.normal(ks[0], (c1, c_in, 3, 3), jnp.float32)
    p['b_c1'] = 0.1 * jax.random.normal(ks[1], (c1,), jnp.float32)
    p['w_c2'] = 0.1 * jax.random.normal(ks[2], (c2, c1, 3, 3), jnp.float32)
    p['b_c2'] = 0.1 * jax.random.normal(ks[3], (c2,), jnp.float32)
    for name, c in (('bn1', c1), ('bn2', c2)):
        p[f'{name}_g'] = jnp.ones((c,), jnp.float32)    # gamma
        p[f'{name}_b'] = jnp.zeros((c,), jnp.float32)   # beta
        p[f'{name}_m'] = jnp.zeros((c,), jnp.float32)   # running_mean
        p[f'{name}_v'] = jnp.ones((c,), jnp.float32)    # running_var
    feat = base_width * 2 * 2                            # flatten size (= 16)
    p['w_l1'] = 0.1 * jax.random.normal(ks[4], (128, feat), jnp.float32)
    p['b_l1'] = 0.1 * jax.random.normal(ks[5], (128,), jnp.float32)
    p['w_l2'] = 0.1 * jax.random.normal(ks[6], (32, 128), jnp.float32)
    p['b_l2'] = 0.1 * jax.random.normal(ks[7], (32,), jnp.float32)
    p['w_l3'] = 0.1 * jax.random.normal(ks[8], (n_output, 32), jnp.float32)
    p['b_l3'] = 0.1 * jax.random.normal(ks[9], (n_output,), jnp.float32)
    return p


if __name__ == "__main__":
    key = jax.random.PRNGKey(0)
    pkey, xkey = jax.random.split(key)
    params = init_params(pkey)
    kparams = build_kernel_params(params)                 # one-time weight/selector prep

    N = 2
    # encoder output / classifier input: (N, base_width*8, 16, 16)  [NCHW]
    x = jax.random.normal(xkey, (N, BASE_WIDTH * 8, 16, 16), jnp.float32)

    fwd = jax.jit(maml_base_forward)
    out = jax.block_until_ready(fwd(x, kparams))

    ref = jax.block_until_ready(jax.jit(reference_forward)(x, params))

    assert out.shape == (N, N_OUTPUT) and out.dtype == jnp.float32
    assert bool(jnp.all(jnp.isfinite(out)))
    max_err = float(jnp.max(jnp.abs(out - ref)))
    assert max_err < 5e-2, f"mismatch vs pure-JAX reference: {max_err}"
    print("KERNEL_OK")
</pallas_src>

<mosaic_0001>
module attributes {stable_mosaic.version = 11 : i64} {
  func.func @_maml_fused_kernel(%arg0: i32, %arg1: memref<1x32x256xf32, #tpu.memory_space<vmem>>, %arg2: memref<4x256x64xf32, #tpu.memory_space<vmem>>, %arg3: memref<9x64x16xf32, #tpu.memory_space<vmem>>, %arg4: memref<9x8x32xf32, #tpu.memory_space<vmem>>, %arg5: memref<8x1xf32, #tpu.memory_space<vmem>>, %arg6: memref<9x16x4xf32, #tpu.memory_space<vmem>>, %arg7: memref<9x4x8xf32, #tpu.memory_space<vmem>>, %arg8: memref<4x1xf32, #tpu.memory_space<vmem>>, %arg9: memref<4x4x128xf32, #tpu.memory_space<vmem>>, %arg10: memref<1x128xf32, #tpu.memory_space<vmem>>, %arg11: memref<128x32xf32, #tpu.memory_space<vmem>>, %arg12: memref<1x32xf32, #tpu.memory_space<vmem>>, %arg13: memref<32x2xf32, #tpu.memory_space<vmem>>, %arg14: memref<1x2xf32, #tpu.memory_space<vmem>>, %arg15: memref<1x1x2xf32, #tpu.memory_space<vmem>>) attributes {dimension_semantics = [#tpu.dimension_semantics<parallel>], iteration_bounds = array<i64: 2>, scalar_prefetch = 0 : i64, scratch_operands = 0 : i64, tpu.core_type = #tpu.core_type<tc>, window_params = [{transform_indices = @transform_0, window_bounds = array<i64: 1, 32, 256>}, {pipeline_mode = #tpu.pipeline_mode<synchronous>, transform_indices = @transform_1, window_bounds = array<i64: 4, 256, 64>}, {pipeline_mode = #tpu.pipeline_mode<synchronous>, transform_indices = @transform_2, window_bounds = array<i64: 9, 64, 16>}, {pipeline_mode = #tpu.pipeline_mode<synchronous>, transform_indices = @transform_3, window_bounds = array<i64: 9, 8, 32>}, {pipeline_mode = #tpu.pipeline_mode<synchronous>, transform_indices = @transform_4, window_bounds = array<i64: 8, 1>}, {pipeline_mode = #tpu.pipeline_mode<synchronous>, transform_indices = @transform_5, window_bounds = array<i64: 9, 16, 4>}, {pipeline_mode = #tpu.pipeline_mode<synchronous>, transform_indices = @transform_6, window_bounds = array<i64: 9, 4, 8>}, {pipeline_mode = #tpu.pipeline_mode<synchronous>, transform_indices = @transform_7, window_bounds = array<i64: 4, 1>}, {pipeline_mode = #tpu.pipeline_mode<synchronous>, transform_indices = @transform_8, window_bounds = array<i64: 4, 4, 128>}, {pipeline_mode = #tpu.pipeline_mode<synchronous>, transform_indices = @transform_9, window_bounds = array<i64: 1, 128>}, {pipeline_mode = #tpu.pipeline_mode<synchronous>, transform_indices = @transform_10, window_bounds = array<i64: 128, 32>}, {pipeline_mode = #tpu.pipeline_mode<synchronous>, transform_indices = @transform_11, window_bounds = array<i64: 1, 32>}, {pipeline_mode = #tpu.pipeline_mode<synchronous>, transform_indices = @transform_12, window_bounds = array<i64: 32, 2>}, {pipeline_mode = #tpu.pipeline_mode<synchronous>, transform_indices = @transform_13, window_bounds = array<i64: 1, 2>}, {transform_indices = @transform_14, window_bounds = array<i64: 1, 1, 2>}]} {
    %c0 = arith.constant 0 : index
    %c0_0 = arith.constant 0 : index
    %c0_1 = arith.constant 0 : index
    %0 = vector.load %arg1[%c0, %c0_0, %c0_1] : memref<1x32x256xf32, #tpu.memory_space<vmem>>, vector<1x32x256xf32>
    %1 = vector.shape_cast %0 : vector<1x32x256xf32> to vector<32x256xf32>
    %c0_2 = arith.constant 0 : index
    %c0_3 = arith.constant 0 : index
    %c0_4 = arith.constant 0 : index
    %2 = vector.load %arg2[%c0_2, %c0_3, %c0_4] : memref<4x256x64xf32, #tpu.memory_space<vmem>>, vector<1x256x64xf32>
    %3 = vector.shape_cast %2 : vector<1x256x64xf32> to vector<256x64xf32>
    %cst = arith.constant dense<0.000000e+00> : vector<32x64xf32>
    %4 = tpu.matmul %1, %3, %cst {dimension_numbers = #tpu.dot_dimension_numbers<[1], [0], [0], [1], [0, 0, 1, 1], [], []>} : vector<32x256xf32>, vector<256x64xf32>, vector<32x64xf32> -> vector<32x64xf32>
    %c1 = arith.constant 1 : index
    %c0_5 = arith.constant 0 : index
    %c0_6 = arith.constant 0 : index
    %5 = vector.load %arg2[%c1, %c0_5, %c0_6] : memref<4x256x64xf32, #tpu.memory_space<vmem>>, vector<1x256x64xf32>
    %6 = vector.shape_cast %5 : vector<1x256x64xf32> to vector<256x64xf32>
    %cst_7 = arith.constant dense<0.000000e+00> : vector<32x64xf32>
    %7 = tpu.matmul %1, %6, %cst_7 {dimension_numbers = #tpu.dot_dimension_numbers<[1], [0], [0], [1], [0, 0, 1, 1], [], []>} : vector<32x256xf32>, vector<256x64xf32>, vector<32x64xf32> -> vector<32x64xf32>
    %c2 = arith.constant 2 : index
    %c0_8 = arith.constant 0 : index
    %c0_9 = arith.constant 0 : index
    %8 = vector.load %arg2[%c2, %c0_8, %c0_9] : memref<4x256x64xf32, #tpu.memory_space<vmem>>, vector<1x256x64xf32>
    %9 = vector.shape_cast %8 : vector<1x256x64xf32> to vector<256x64xf32>
    %cst_10 = arith.constant dense<0.000000e+00> : vector<32x64xf32>
    %10 = tpu.matmul %1, %9, %cst_10 {dimension_numbers = #tpu.dot_dimension_numbers<[1], [0], [0], [1], [0, 0, 1, 1], [], []>} : vector<32x256xf32>, vector<256x64xf32>, vector<32x64xf32> -> vector<32x64xf32>
    %c3 = arith.constant 3 : index
    %c0_11 = arith.constant 0 : index
    %c0_12 = arith.constant 0 : index
    %11 = vector.load %arg2[%c3, %c0_11, %c0_12] : memref<4x256x64xf32, #tpu.memory_space<vmem>>, vector<1x256x64xf32>
    %12 = vector.shape_cast %11 : vector<1x256x64xf32> to vector<256x64xf32>
    %cst_13 = arith.constant dense<0.000000e+00> : vector<32x64xf32>
    %13 = tpu.matmul %1, %12, %cst_13 {dimension_numbers = #tpu.dot_dimension_numbers<[1], [0], [0], [1], [0, 0, 1, 1], [], []>} : vector<32x256xf32>, vector<256x64xf32>, vector<32x64xf32> -> vector<32x64xf32>
    %14 = arith.maximumf %4, %7 : vector<32x64xf32>
    %15 = arith.maximumf %10, %13 : vector<32x64xf32>
    %16 = arith.maximumf %14, %15 : vector<32x64xf32>
    %c0_14 = arith.constant 0 : index
    %c0_15 = arith.constant 0 : index
    %c0_16 = arith.constant 0 : index
    %17 = vector.load %arg3[%c0_14, %c0_15, %c0_16] : memref<9x64x16xf32, #tpu.memory_space<vmem>>, vector<1x64x16xf32>
    %18 = vector.shape_cast %17 : vector<1x64x16xf32> to vector<64x16xf32>
    %cst_17 = arith.constant dense<0.000000e+00> : vector<32x16xf32>
    %19 = tpu.matmul %16, %18, %cst_17 {dimension_numbers = #tpu.dot_dimension_numbers<[1], [0], [0], [1], [0, 0, 1, 1], [], []>} : vector<32x64xf32>, vector<64x16xf32>, vector<32x16xf32> -> vector<32x16xf32>
    %c0_18 = arith.constant 0 : index
    %c0_19 = arith.constant 0 : index
    %c0_20 = arith.constant 0 : index
    %20 = vector.load %arg4[%c0_18, %c0_19, %c0_20] : memref<9x8x32xf32, #tpu.memory_space<vmem>>, vector<1x8x32xf32>
    %21 = vector.shape_cast %20 : vector<1x8x32xf32> to vector<8x32xf32>
    %cst_21 = arith.constant dense<0.000000e+00> : vector<8x16xf32>
    %22 = tpu.matmul %21, %19, %cst_21 {dimension_numbers = #tpu.dot_dimension_numbers<[1], [0], [0], [1], [0, 0, 1, 1], [], []>} : vector<8x32xf32>, vector<32x16xf32>, vector<8x16xf32> -> vector<8x16xf32>
    %c1_22 = arith.constant 1 : index
    %c0_23 = arith.constant 0 : index
    %c0_24 = arith.constant 0 : index
    %23 = vector.load %arg3[%c1_22, %c0_23, %c0_24] : memref<9x64x16xf32, #tpu.memory_space<vmem>>, vector<1x64x16xf32>
    %24 = vector.shape_cast %23 : vector<1x64x16xf32> to vector<64x16xf32>
    %cst_25 = arith.constant dense<0.000000e+00> : vector<32x16xf32>
    %25 = tpu.matmul %16, %24, %cst_25 {dimension_numbers = #tpu.dot_dimension_numbers<[1], [0], [0], [1], [0, 0, 1, 1], [], []>} : vector<32x64xf32>, vector<64x16xf32>, vector<32x16xf32> -> vector<32x16xf32>
    %c1_26 = arith.constant 1 : index
    %c0_27 = arith.constant 0 : index
    %c0_28 = arith.constant 0 : index
    %26 = vector.load %arg4[%c1_26, %c0_27, %c0_28] : memref<9x8x32xf32, #tpu.memory_space<vmem>>, vector<1x8x32xf32>
    %27 = vector.shape_cast %26 : vector<1x8x32xf32> to vector<8x32xf32>
    %cst_29 = arith.constant dense<0.000000e+00> : vector<8x16xf32>
    %28 = tpu.matmul %27, %25, %cst_29 {dimension_numbers = #tpu.dot_dimension_numbers<[1], [0], [0], [1], [0, 0, 1, 1], [], []>} : vector<8x32xf32>, vector<32x16xf32>, vector<8x16xf32> -> vector<8x16xf32>
    %29 = arith.addf %22, %28 : vector<8x16xf32>
    %c2_30 = arith.constant 2 : index
    %c0_31 = arith.constant 0 : index
    %c0_32 = arith.constant 0 : index
    %30 = vector.load %arg3[%c2_30, %c0_31, %c0_32] : memref<9x64x16xf32, #tpu.memory_space<vmem>>, vector<1x64x16xf32>
    %31 = vector.shape_cast %30 : vector<1x64x16xf32> to vector<64x16xf32>
    %cst_33 = arith.constant dense<0.000000e+00> : vector<32x16xf32>
    %32 = tpu.matmul %16, %31, %cst_33 {dimension_numbers = #tpu.dot_dimension_numbers<[1], [0], [0], [1], [0, 0, 1, 1], [], []>} : vector<32x64xf32>, vector<64x16xf32>, vector<32x16xf32> -> vector<32x16xf32>
    %c2_34 = arith.constant 2 : index
    %c0_35 = arith.constant 0 : index
    %c0_36 = arith.constant 0 : index
    %33 = vector.load %arg4[%c2_34, %c0_35, %c0_36] : memref<9x8x32xf32, #tpu.memory_space<vmem>>, vector<1x8x32xf32>
    %34 = vector.shape_cast %33 : vector<1x8x32xf32> to vector<8x32xf32>
    %cst_37 = arith.constant dense<0.000000e+00> : vector<8x16xf32>
    %35 = tpu.matmul %34, %32, %cst_37 {dimension_numbers = #tpu.dot_dimension_numbers<[1], [0], [0], [1], [0, 0, 1, 1], [], []>} : vector<8x32xf32>, vector<32x16xf32>, vector<8x16xf32> -> vector<8x16xf32>
    %36 = arith.addf %29, %35 : vector<8x16xf32>
    %c3_38 = arith.constant 3 : index
    %c0_39 = arith.constant 0 : index
    %c0_40 = arith.constant 0 : index
    %37 = vector.load %arg3[%c3_38, %c0_39, %c0_40] : memref<9x64x16xf32, #tpu.memory_space<vmem>>, vector<1x64x16xf32>
    %38 = vector.shape_cast %37 : vector<1x64x16xf32> to vector<64x16xf32>
    %cst_41 = arith.constant dense<0.000000e+00> : vector<32x16xf32>
    %39 = tpu.matmul %16, %38, %cst_41 {dimension_numbers = #tpu.dot_dimension_numbers<[1], [0], [0], [1], [0, 0, 1, 1], [], []>} : vector<32x64xf32>, vector<64x16xf32>, vector<32x16xf32> -> vector<32x16xf32>
    %c3_42 = arith.constant 3 : index
    %c0_43 = arith.constant 0 : index
    %c0_44 = arith.constant 0 : index
    %40 = vector.load %arg4[%c3_42, %c0_43, %c0_44] : memref<9x8x32xf32, #tpu.memory_space<vmem>>, vector<1x8x32xf32>
    %41 = vector.shape_cast %40 : vector<1x8x32xf32> to vector<8x32xf32>
    %cst_45 = arith.constant dense<0.000000e+00> : vector<8x16xf32>
    %42 = tpu.matmul %41, %39, %cst_45 {dimension_numbers = #tpu.dot_dimension_numbers<[1], [0], [0], [1], [0, 0, 1, 1], [], []>} : vector<8x32xf32>, vector<32x16xf32>, vector<8x16xf32> -> vector<8x16xf32>
    %43 = arith.addf %36, %42 : vector<8x16xf32>
    %c4 = arith.constant 4 : index
    %c0_46 = arith.constant 0 : index
    %c0_47 = arith.constant 0 : index
    %44 = vector.load %arg3[%c4, %c0_46, %c0_47] : memref<9x64x16xf32, #tpu.memory_space<vmem>>, vector<1x64x16xf32>
    %45 = vector.shape_cast %44 : vector<1x64x16xf32> to vector<64x16xf32>
    %cst_48 = arith.constant dense<0.000000e+00> : vector<32x16xf32>
    %46 = tpu.matmul %16, %45, %cst_48 {dimension_numbers = #tpu.dot_dimension_numbers<[1], [0], [0], [1], [0, 0, 1, 1], [], []>} : vector<32x64xf32>, vector<64x16xf32>, vector<32x16xf32> -> vector<32x16xf32>
    %c4_49 = arith.constant 4 : index
    %c0_50 = arith.constant 0 : index
    %c0_51 = arith.constant 0 : index
    %47 = vector.load %arg4[%c4_49, %c0_50, %c0_51] : memref<9x8x32xf32, #tpu.memory_space<vmem>>, vector<1x8x32xf32>
    %48 = vector.shape_cast %47 : vector<1x8x32xf32> to vector<8x32xf32>
    %cst_52 = arith.constant dense<0.000000e+00> : vector<8x16xf32>
    %49 = tpu.matmul %48, %46, %cst_52 {dimension_numbers = #tpu.dot_dimension_numbers<[1], [0], [0], [1], [0, 0, 1, 1], [], []>} : vector<8x32xf32>, vector<32x16xf32>, vector<8x16xf32> -> vector<8x16xf32>
    %50 = arith.addf %43, %49 : vector<8x16xf32>
    %c5 = arith.constant 5 : index
    %c0_53 = arith.constant 0 : index
    %c0_54 = arith.constant 0 : index
    %51 = vector.load %arg3[%c5, %c0_53, %c0_54] : memref<9x64x16xf32, #tpu.memory_space<vmem>>, vector<1x64x16xf32>
    %52 = vector.shape_cast %51 : vector<1x64x16xf32> to vector<64x16xf32>
    %cst_55 = arith.constant dense<0.000000e+00> : vector<32x16xf32>
    %53 = tpu.matmul %16, %52, %cst_55 {dimension_numbers = #tpu.dot_dimension_numbers<[1], [0], [0], [1], [0, 0, 1, 1], [], []>} : vector<32x64xf32>, vector<64x16xf32>, vector<32x16xf32> -> vector<32x16xf32>
    %c5_56 = arith.constant 5 : index
    %c0_57 = arith.constant 0 : index
    %c0_58 = arith.constant 0 : index
    %54 = vector.load %arg4[%c5_56, %c0_57, %c0_58] : memref<9x8x32xf32, #tpu.memory_space<vmem>>, vector<1x8x32xf32>
    %55 = vector.shape_cast %54 : vector<1x8x32xf32> to vector<8x32xf32>
    %cst_59 = arith.constant dense<0.000000e+00> : vector<8x16xf32>
    %56 = tpu.matmul %55, %53, %cst_59 {dimension_numbers = #tpu.dot_dimension_numbers<[1], [0], [0], [1], [0, 0, 1, 1], [], []>} : vector<8x32xf32>, vector<32x16xf32>, vector<8x16xf32> -> vector<8x16xf32>
    %57 = arith.addf %50, %56 : vector<8x16xf32>
    %c6 = arith.constant 6 : index
    %c0_60 = arith.constant 0 : index
    %c0_61 = arith.constant 0 : index
    %58 = vector.load %arg3[%c6, %c0_60, %c0_61] : memref<9x64x16xf32, #tpu.memory_space<vmem>>, vector<1x64x16xf32>
    %59 = vector.shape_cast %58 : vector<1x64x16xf32> to vector<64x16xf32>
    %cst_62 = arith.constant dense<0.000000e+00> : vector<32x16xf32>
    %60 = tpu.matmul %16, %59, %cst_62 {dimension_numbers = #tpu.dot_dimension_numbers<[1], [0], [0], [1], [0, 0, 1, 1], [], []>} : vector<32x64xf32>, vector<64x16xf32>, vector<32x16xf32> -> vector<32x16xf32>
    %c6_63 = arith.constant 6 : index
    %c0_64 = arith.constant 0 : index
    %c0_65 = arith.constant 0 : index
    %61 = vector.load %arg4[%c6_63, %c0_64, %c0_65] : memref<9x8x32xf32, #tpu.memory_space<vmem>>, vector<1x8x32xf32>
    %62 = vector.shape_cast %61 : vector<1x8x32xf32> to vector<8x32xf32>
    %cst_66 = arith.constant dense<0.000000e+00> : vector<8x16xf32>
    %63 = tpu.matmul %62, %60, %cst_66 {dimension_numbers = #tpu.dot_dimension_numbers<[1], [0], [0], [1], [0, 0, 1, 1], [], []>} : vector<8x32xf32>, vector<32x16xf32>, vector<8x16xf32> -> vector<8x16xf32>
    %64 = arith.addf %57, %63 : vector<8x16xf32>
    %c7 = arith.constant 7 : index
    %c0_67 = arith.constant 0 : index
    %c0_68 = arith.constant 0 : index
    %65 = vector.load %arg3[%c7, %c0_67, %c0_68] : memref<9x64x16xf32, #tpu.memory_space<vmem>>, vector<1x64x16xf32>
    %66 = vector.shape_cast %65 : vector<1x64x16xf32> to vector<64x16xf32>
    %cst_69 = arith.constant dense<0.000000e+00> : vector<32x16xf32>
    %67 = tpu.matmul %16, %66, %cst_69 {dimension_numbers = #tpu.dot_dimension_numbers<[1], [0], [0], [1], [0, 0, 1, 1], [], []>} : vector<32x64xf32>, vector<64x16xf32>, vector<32x16xf32> -> vector<32x16xf32>
    %c7_70 = arith.constant 7 : index
    %c0_71 = arith.constant 0 : index
    %c0_72 = arith.constant 0 : index
    %68 = vector.load %arg4[%c7_70, %c0_71, %c0_72] : memref<9x8x32xf32, #tpu.memory_space<vmem>>, vector<1x8x32xf32>
    %69 = vector.shape_cast %68 : vector<1x8x32xf32> to vector<8x32xf32>
    %cst_73 = arith.constant dense<0.000000e+00> : vector<8x16xf32>
    %70 = tpu.matmul %69, %67, %cst_73 {dimension_numbers = #tpu.dot_dimension_numbers<[1], [0], [0], [1], [0, 0, 1, 1], [], []>} : vector<8x32xf32>, vector<32x16xf32>, vector<8x16xf32> -> vector<8x16xf32>
    %71 = arith.addf %64, %70 : vector<8x16xf32>
    %c8 = arith.constant 8 : index
    %c0_74 = arith.constant 0 : index
    %c0_75 = arith.constant 0 : index
    %72 = vector.load %arg3[%c8, %c0_74, %c0_75] : memref<9x64x16xf32, #tpu.memory_space<vmem>>, vector<1x64x16xf32>
    %73 = vector.shape_cast %72 : vector<1x64x16xf32> to vector<64x16xf32>
    %cst_76 = arith.constant dense<0.000000e+00> : vector<32x16xf32>
    %74 = tpu.matmul %16, %73, %cst_76 {dimension_numbers = #tpu.dot_dimension_numbers<[1], [0], [0], [1], [0, 0, 1, 1], [], []>} : vector<32x64xf32>, vector<64x16xf32>, vector<32x16xf32> -> vector<32x16xf32>
    %c8_77 = arith.constant 8 : index
    %c0_78 = arith.constant 0 : index
    %c0_79 = arith.constant 0 : index
    %75 = vector.load %arg4[%c8_77, %c0_78, %c0_79] : memref<9x8x32xf32, #tpu.memory_space<vmem>>, vector<1x8x32xf32>
    %76 = vector.shape_cast %75 : vector<1x8x32xf32> to vector<8x32xf32>
    %cst_80 = arith.constant dense<0.000000e+00> : vector<8x16xf32>
    %77 = tpu.matmul %76, %74, %cst_80 {dimension_numbers = #tpu.dot_dimension_numbers<[1], [0], [0], [1], [0, 0, 1, 1], [], []>} : vector<8x32xf32>, vector<32x16xf32>, vector<8x16xf32> -> vector<8x16xf32>
    %78 = arith.addf %71, %77 : vector<8x16xf32>
    %c0_81 = arith.constant 0 : index
    %c0_82 = arith.constant 0 : index
    %79 = vector.load %arg5[%c0_81, %c0_82] : memref<8x1xf32, #tpu.memory_space<vmem>>, vector<8x1xf32>
    %80 = vector.broadcast %79 : vector<8x1xf32> to vector<8x16xf32>
    %81 = arith.addf %78, %80 : vector<8x16xf32>
    %cst_83 = arith.constant 0.000000e+00 : f32
    %82 = vector.broadcast %cst_83 : f32 to vector<8x16xf32>
    %83 = arith.maximumf %81, %82 : vector<8x16xf32>
    %c0_84 = arith.constant 0 : index
    %c0_85 = arith.constant 0 : index
    %c0_86 = arith.constant 0 : index
    %84 = vector.load %arg6[%c0_84, %c0_85, %c0_86] : memref<9x16x4xf32, #tpu.memory_space<vmem>>, vector<1x16x4xf32>
    %85 = vector.shape_cast %84 : vector<1x16x4xf32> to vector<16x4xf32>
    %cst_87 = arith.constant dense<0.000000e+00> : vector<8x4xf32>
    %86 = tpu.matmul %83, %85, %cst_87 {dimension_numbers = #tpu.dot_dimension_numbers<[1], [0], [0], [1], [0, 0, 1, 1], [], []>} : vector<8x16xf32>, vector<16x4xf32>, vector<8x4xf32> -> vector<8x4xf32>
    %c0_88 = arith.constant 0 : index
    %c0_89 = arith.constant 0 : index
    %c0_90 = arith.constant 0 : index
    %87 = vector.load %arg7[%c0_88, %c0_89, %c0_90] : memref<9x4x8xf32, #tpu.memory_space<vmem>>, vector<1x4x8xf32>
    %88 = vector.shape_cast %87 : vector<1x4x8xf32> to vector<4x8xf32>
    %cst_91 = arith.constant dense<0.000000e+00> : vector<4x4xf32>
    %89 = tpu.matmul %88, %86, %cst_91 {dimension_numbers = #tpu.dot_dimension_numbers<[1], [0], [0], [1], [0, 0, 1, 1], [], []>} : vector<4x8xf32>, vector<8x4xf32>, vector<4x4xf32> -> vector<4x4xf32>
    %c1_92 = arith.constant 1 : index
    %c0_93 = arith.constant 0 : index
    %c0_94 = arith.constant 0 : index
    %90 = vector.load %arg6[%c1_92, %c0_93, %c0_94] : memref<9x16x4xf32, #tpu.memory_space<vmem>>, vector<1x16x4xf32>
    %91 = vector.shape_cast %90 : vector<1x16x4xf32> to vector<16x4xf32>
    %cst_95 = arith.constant dense<0.000000e+00> : vector<8x4xf32>
    %92 = tpu.matmul %83, %91, %cst_95 {dimension_numbers = #tpu.dot_dimension_numbers<[1], [0], [0], [1], [0, 0, 1, 1], [], []>} : vector<8x16xf32>, vector<16x4xf32>, vector<8x4xf32> -> vector<8x4xf32>
    %c1_96 = arith.constant 1 : index
    %c0_97 = arith.constant 0 : index
    %c0_98 = arith.constant 0 : index
    %93 = vector.load %arg7[%c1_96, %c0_97, %c0_98] : memref<9x4x8xf32, #tpu.memory_space<vmem>>, vector<1x4x8xf32>
    %94 = vector.shape_cast %93 : vector<1x4x8xf32> to vector<4x8xf32>
    %cst_99 = arith.constant dense<0.000000e+00> : vector<4x4xf32>
    %95 = tpu.matmul %94, %92, %cst_99 {dimension_numbers = #tpu.dot_dimension_numbers<[1], [0], [0], [1], [0, 0, 1, 1], [], []>} : vector<4x8xf32>, vector<8x4xf32>, vector<4x4xf32> -> vector<4x4xf32>
    %96 = arith.addf %89, %95 : vector<4x4xf32>
    %c2_100 = arith.constant 2 : index
    %c0_101 = arith.constant 0 : index
    %c0_102 = arith.constant 0 : index
    %97 = vector.load %arg6[%c2_100, %c0_101, %c0_102] : memref<9x16x4xf32, #tpu.memory_space<vmem>>, vector<1x16x4xf32>
    %98 = vector.shape_cast %97 : vector<1x16x4xf32> to vector<16x4xf32>
    %cst_103 = arith.constant dense<0.000000e+00> : vector<8x4xf32>
    %99 = tpu.matmul %83, %98, %cst_103 {dimension_numbers = #tpu.dot_dimension_numbers<[1], [0], [0], [1], [0, 0, 1, 1], [], []>} : vector<8x16xf32>, vector<16x4xf32>, vector<8x4xf32> -> vector<8x4xf32>
    %c2_104 = arith.constant 2 : index
    %c0_105 = arith.constant 0 : index
    %c0_106 = arith.constant 0 : index
    %100 = vector.load %arg7[%c2_104, %c0_105, %c0_106] : memref<9x4x8xf32, #tpu.memory_space<vmem>>, vector<1x4x8xf32>
    %101 = vector.shape_cast %100 : vector<1x4x8xf32> to vector<4x8xf32>
    %cst_107 = arith.constant dense<0.000000e+00> : vector<4x4xf32>
    %102 = tpu.matmul %101, %99, %cst_107 {dimension_numbers = #tpu.dot_dimension_numbers<[1], [0], [0], [1], [0, 0, 1, 1], [], []>} : vector<4x8xf32>, vector<8x4xf32>, vector<4x4xf32> -> vector<4x4xf32>
    %103 = arith.addf %96, %102 : vector<4x4xf32>
    %c3_108 = arith.constant 3 : index
    %c0_109 = arith.constant 0 : index
    %c0_110 = arith.constant 0 : index
    %104 = vector.load %arg6[%c3_108, %c0_109, %c0_110] : memref<9x16x4xf32, #tpu.memory_space<vmem>>, vector<1x16x4xf32>
    %105 = vector.shape_cast %104 : vector<1x16x4xf32> to vector<16x4xf32>
    %cst_111 = arith.constant dense<0.000000e+00> : vector<8x4xf32>
    %106 = tpu.matmul %83, %105, %cst_111 {dimension_numbers = #tpu.dot_dimension_numbers<[1], [0], [0], [1], [0, 0, 1, 1], [], []>} : vector<8x16xf32>, vector<16x4xf32>, vector<8x4xf32> -> vector<8x4xf32>
    %c3_112 = arith.constant 3 : index
    %c0_113 = arith.constant 0 : index
    %c0_114 = arith.constant 0 : index
    %107 = vector.load %arg7[%c3_112, %c0_113, %c0_114] : memref<9x4x8xf32, #tpu.memory_space<vmem>>, vector<1x4x8xf32>
    %108 = vector.shape_cast %107 : vector<1x4x8xf32> to vector<4x8xf32>
    %cst_115 = arith.constant dense<0.000000e+00> : vector<4x4xf32>
    %109 = tpu.matmul %108, %106, %cst_115 {dimension_numbers = #tpu.dot_dimension_numbers<[1], [0], [0], [1], [0, 0, 1, 1], [], []>} : vector<4x8xf32>, vector<8x4xf32>, vector<4x4xf32> -> vector<4x4xf32>
    %110 = arith.addf %103, %109 : vector<4x4xf32>
    %c4_116 = arith.constant 4 : index
    %c0_117 = arith.constant 0 : index
    %c0_118 = arith.constant 0 : index
    %111 = vector.load %arg6[%c4_116, %c0_117, %c0_118] : memref<9x16x4xf32, #tpu.memory_space<vmem>>, vector<1x16x4xf32>
    %112 = vector.shape_cast %111 : vector<1x16x4xf32> to vector<16x4xf32>
    %cst_119 = arith.constant dense<0.000000e+00> : vector<8x4xf32>
    %113 = tpu.matmul %83, %112, %cst_119 {dimension_numbers = #tpu.dot_dimension_numbers<[1], [0], [0], [1], [0, 0, 1, 1], [], []>} : vector<8x16xf32>, vector<16x4xf32>, vector<8x4xf32> -> vector<8x4xf32>
    %c4_120 = arith.constant 4 : index
    %c0_121 = arith.constant 0 : index
    %c0_122 = arith.constant 0 : index
    %114 = vector.load %arg7[%c4_120, %c0_121, %c0_122] : memref<9x4x8xf32, #tpu.memory_space<vmem>>, vector<1x4x8xf32>
    %115 = vector.shape_cast %114 : vector<1x4x8xf32> to vector<4x8xf32>
    %cst_123 = arith.constant dense<0.000000e+00> : vector<4x4xf32>
    %116 = tpu.matmul %115, %113, %cst_123 {dimension_numbers = #tpu.dot_dimension_numbers<[1], [0], [0], [1], [0, 0, 1, 1], [], []>} : vector<4x8xf32>, vector<8x4xf32>, vector<4x4xf32> -> vector<4x4xf32>
    %117 = arith.addf %110, %116 : vector<4x4xf32>
    %c5_124 = arith.constant 5 : index
    %c0_125 = arith.constant 0 : index
    %c0_126 = arith.constant 0 : index
    %118 = vector.load %arg6[%c5_124, %c0_125, %c0_126] : memref<9x16x4xf32, #tpu.memory_space<vmem>>, vector<1x16x4xf32>
    %119 = vector.shape_cast %118 : vector<1x16x4xf32> to vector<16x4xf32>
    %cst_127 = arith.constant dense<0.000000e+00> : vector<8x4xf32>
    %120 = tpu.matmul %83, %119, %cst_127 {dimension_numbers = #tpu.dot_dimension_numbers<[1], [0], [0], [1], [0, 0, 1, 1], [], []>} : vector<8x16xf32>, vector<16x4xf32>, vector<8x4xf32> -> vector<8x4xf32>
    %c5_128 = arith.constant 5 : index
    %c0_129 = arith.constant 0 : index
    %c0_130 = arith.constant 0 : index
    %121 = vector.load %arg7[%c5_128, %c0_129, %c0_130] : memref<9x4x8xf32, #tpu.memory_space<vmem>>, vector<1x4x8xf32>
    %122 = vector.shape_cast %121 : vector<1x4x8xf32> to vector<4x8xf32>
    %cst_131 = arith.constant dense<0.000000e+00> : vector<4x4xf32>
    %123 = tpu.matmul %122, %120, %cst_131 {dimension_numbers = #tpu.dot_dimension_numbers<[1], [0], [0], [1], [0, 0, 1, 1], [], []>} : vector<4x8xf32>, vector<8x4xf32>, vector<4x4xf32> -> vector<4x4xf32>
    %124 = arith.addf %117, %123 : vector<4x4xf32>
    %c6_132 = arith.constant 6 : index
    %c0_133 = arith.constant 0 : index
    %c0_134 = arith.constant 0 : index
    %125 = vector.load %arg6[%c6_132, %c0_133, %c0_134] : memref<9x16x4xf32, #tpu.memory_space<vmem>>, vector<1x16x4xf32>
    %126 = vector.shape_cast %125 : vector<1x16x4xf32> to vector<16x4xf32>
    %cst_135 = arith.constant dense<0.000000e+00> : vector<8x4xf32>
    %127 = tpu.matmul %83, %126, %cst_135 {dimension_numbers = #tpu.dot_dimension_numbers<[1], [0], [0], [1], [0, 0, 1, 1], [], []>} : vector<8x16xf32>, vector<16x4xf32>, vector<8x4xf32> -> vector<8x4xf32>
    %c6_136 = arith.constant 6 : index
    %c0_137 = arith.constant 0 : index
    %c0_138 = arith.constant 0 : index
    %128 = vector.load %arg7[%c6_136, %c0_137, %c0_138] : memref<9x4x8xf32, #tpu.memory_space<vmem>>, vector<1x4x8xf32>
    %129 = vector.shape_cast %128 : vector<1x4x8xf32> to vector<4x8xf32>
    %cst_139 = arith.constant dense<0.000000e+00> : vector<4x4xf32>
    %130 = tpu.matmul %129, %127, %cst_139 {dimension_numbers = #tpu.dot_dimension_numbers<[1], [0], [0], [1], [0, 0, 1, 1], [], []>} : vector<4x8xf32>, vector<8x4xf32>, vector<4x4xf32> -> vector<4x4xf32>
    %131 = arith.addf %124, %130 : vector<4x4xf32>
    %c7_140 = arith.constant 7 : index
    %c0_141 = arith.constant 0 : index
    %c0_142 = arith.constant 0 : index
    %132 = vector.load %arg6[%c7_140, %c0_141, %c0_142] : memref<9x16x4xf32, #tpu.memory_space<vmem>>, vector<1x16x4xf32>
    %133 = vector.shape_cast %132 : vector<1x16x4xf32> to vector<16x4xf32>
    %cst_143 = arith.constant dense<0.000000e+00> : vector<8x4xf32>
    %134 = tpu.matmul %83, %133, %cst_143 {dimension_numbers = #tpu.dot_dimension_numbers<[1], [0], [0], [1], [0, 0, 1, 1], [], []>} : vector<8x16xf32>, vector<16x4xf32>, vector<8x4xf32> -> vector<8x4xf32>
    %c7_144 = arith.constant 7 : index
    %c0_145 = arith.constant 0 : index
    %c0_146 = arith.constant 0 : index
    %135 = vector.load %arg7[%c7_144, %c0_145, %c0_146] : memref<9x4x8xf32, #tpu.memory_space<vmem>>, vector<1x4x8xf32>
    %136 = vector.shape_cast %135 : vector<1x4x8xf32> to vector<4x8xf32>
    %cst_147 = arith.constant dense<0.000000e+00> : vector<4x4xf32>
    %137 = tpu.matmul %136, %134, %cst_147 {dimension_numbers = #tpu.dot_dimension_numbers<[1], [0], [0], [1], [0, 0, 1, 1], [], []>} : vector<4x8xf32>, vector<8x4xf32>, vector<4x4xf32> -> vector<4x4xf32>
    %138 = arith.addf %131, %137 : vector<4x4xf32>
    %c8_148 = arith.constant 8 : index
    %c0_149 = arith.constant 0 : index
    %c0_150 = arith.constant 0 : index
    %139 = vector.load %arg6[%c8_148, %c0_149, %c0_150] : memref<9x16x4xf32, #tpu.memory_space<vmem>>, vector<1x16x4xf32>
    %140 = vector.shape_cast %139 : vector<1x16x4xf32> to vector<16x4xf32>
    %cst_151 = arith.constant dense<0.000000e+00> : vector<8x4xf32>
    %141 = tpu.matmul %83, %140, %cst_151 {dimension_numbers = #tpu.dot_dimension_numbers<[1], [0], [0], [1], [0, 0, 1, 1], [], []>} : vector<8x16xf32>, vector<16x4xf32>, vector<8x4xf32> -> vector<8x4xf32>
    %c8_152 = arith.constant 8 : index
    %c0_153 = arith.constant 0 : index
    %c0_154 = arith.constant 0 : index
    %142 = vector.load %arg7[%c8_152, %c0_153, %c0_154] : memref<9x4x8xf32, #tpu.memory_space<vmem>>, vector<1x4x8xf32>
    %143 = vector.shape_cast %142 : vector<1x4x8xf32> to vector<4x8xf32>
    %cst_155 = arith.constant dense<0.000000e+00> : vector<4x4xf32>
    %144 = tpu.matmul %143, %141, %cst_155 {dimension_numbers = #tpu.dot_dimension_numbers<[1], [0], [0], [1], [0, 0, 1, 1], [], []>} : vector<4x8xf32>, vector<8x4xf32>, vector<4x4xf32> -> vector<4x4xf32>
    %145 = arith.addf %138, %144 : vector<4x4xf32>
    %c0_156 = arith.constant 0 : index
    %c0_157 = arith.constant 0 : index
    %146 = vector.load %arg8[%c0_156, %c0_157] : memref<4x1xf32, #tpu.memory_space<vmem>>, vector<4x1xf32>
    %147 = vector.broadcast %146 : vector<4x1xf32> to vector<4x4xf32>
    %148 = arith.addf %145, %147 : vector<4x4xf32>
    %cst_158 = arith.constant 0.000000e+00 : f32
    %149 = vector.broadcast %cst_158 : f32 to vector<4x4xf32>
    %150 = arith.maximumf %148, %149 : vector<4x4xf32>
    %151 = vector.extract_strided_slice %150 {offsets = [0, 0], sizes = [1, 4], strides = [1, 1]} : vector<4x4xf32> to vector<1x4xf32>
    %c0_159 = arith.constant 0 : index
    %c0_160 = arith.constant 0 : index
    %c0_161 = arith.constant 0 : index
    %152 = vector.load %arg9[%c0_159, %c0_160, %c0_161] : memref<4x4x128xf32, #tpu.memory_space<vmem>>, vector<1x4x128xf32>
    %153 = vector.shape_cast %152 : vector<1x4x128xf32> to vector<4x128xf32>
    %cst_162 = arith.constant dense<0.000000e+00> : vector<1x128xf32>
    %154 = tpu.matmul %151, %153, %cst_162 {dimension_numbers = #tpu.dot_dimension_numbers<[1], [0], [0], [1], [0, 0, 1, 1], [], []>} : vector<1x4xf32>, vector<4x128xf32>, vector<1x128xf32> -> vector<1x128xf32>
    %155 = vector.extract_strided_slice %150 {offsets = [1, 0], sizes = [1, 4], strides = [1, 1]} : vector<4x4xf32> to vector<1x4xf32>
    %c1_163 = arith.constant 1 : index
    %c0_164 = arith.constant 0 : index
    %c0_165 = arith.constant 0 : index
    %156 = vector.load %arg9[%c1_163, %c0_164, %c0_165] : memref<4x4x128xf32, #tpu.memory_space<vmem>>, vector<1x4x128xf32>
    %157 = vector.shape_cast %156 : vector<1x4x128xf32> to vector<4x128xf32>
    %cst_166 = arith.constant dense<0.000000e+00> : vector<1x128xf32>
    %158 = tpu.matmul %155, %157, %cst_166 {dimension_numbers = #tpu.dot_dimension_numbers<[1], [0], [0], [1], [0, 0, 1, 1], [], []>} : vector<1x4xf32>, vector<4x128xf32>, vector<1x128xf32> -> vector<1x128xf32>
    %159 = arith.addf %154, %158 : vector<1x128xf32>
    %160 = vector.extract_strided_slice %150 {offsets = [2, 0], sizes = [1, 4], strides = [1, 1]} : vector<4x4xf32> to vector<1x4xf32>
    %c2_167 = arith.constant 2 : index
    %c0_168 = arith.constant 0 : index
    %c0_169 = arith.constant 0 : index
    %161 = vector.load %arg9[%c2_167, %c0_168, %c0_169] : memref<4x4x128xf32, #tpu.memory_space<vmem>>, vector<1x4x128xf32>
    %162 = vector.shape_cast %161 : vector<1x4x128xf32> to vector<4x128xf32>
    %cst_170 = arith.constant dense<0.000000e+00> : vector<1x128xf32>
    %163 = tpu.matmul %160, %162, %cst_170 {dimension_numbers = #tpu.dot_dimension_numbers<[1], [0], [0], [1], [0, 0, 1, 1], [], []>} : vector<1x4xf32>, vector<4x128xf32>, vector<1x128xf32> -> vector<1x128xf32>
    %164 = arith.addf %159, %163 : vector<1x128xf32>
    %165 = vector.extract_strided_slice %150 {offsets = [3, 0], sizes = [1, 4], strides = [1, 1]} : vector<4x4xf32> to vector<1x4xf32>
    %c3_171 = arith.constant 3 : index
    %c0_172 = arith.constant 0 : index
    %c0_173 = arith.constant 0 : index
    %166 = vector.load %arg9[%c3_171, %c0_172, %c0_173] : memref<4x4x128xf32, #tpu.memory_space<vmem>>, vector<1x4x128xf32>
    %167 = vector.shape_cast %166 : vector<1x4x128xf32> to vector<4x128xf32>
    %cst_174 = arith.constant dense<0.000000e+00> : vector<1x128xf32>
    %168 = tpu.matmul %165, %167, %cst_174 {dimension_numbers = #tpu.dot_dimension_numbers<[1], [0], [0], [1], [0, 0, 1, 1], [], []>} : vector<1x4xf32>, vector<4x128xf32>, vector<1x128xf32> -> vector<1x128xf32>
    %169 = arith.addf %164, %168 : vector<1x128xf32>
    %c0_175 = arith.constant 0 : index
    %c0_176 = arith.constant 0 : index
    %170 = vector.load %arg10[%c0_175, %c0_176] : memref<1x128xf32, #tpu.memory_space<vmem>>, vector<1x128xf32>
    %171 = arith.addf %169, %170 : vector<1x128xf32>
    %cst_177 = arith.constant 0.000000e+00 : f32
    %172 = vector.broadcast %cst_177 : f32 to vector<1x128xf32>
    %173 = arith.maximumf %171, %172 : vector<1x128xf32>
    %c0_178 = arith.constant 0 : index
    %c0_179 = arith.constant 0 : index
    %174 = vector.load %arg11[%c0_178, %c0_179] : memref<128x32xf32, #tpu.memory_space<vmem>>, vector<128x32xf32>
    %cst_180 = arith.constant dense<0.000000e+00> : vector<1x32xf32>
    %175 = tpu.matmul %173, %174, %cst_180 {dimension_numbers = #tpu.dot_dimension_numbers<[1], [0], [0], [1], [0, 0, 1, 1], [], []>} : vector<1x128xf32>, vector<128x32xf32>, vector<1x32xf32> -> vector<1x32xf32>
    %c0_181 = arith.constant 0 : index
    %c0_182 = arith.constant 0 : index
    %176 = vector.load %arg12[%c0_181, %c0_182] : memref<1x32xf32, #tpu.memory_space<vmem>>, vector<1x32xf32>
    %177 = arith.addf %175, %176 : vector<1x32xf32>
    %cst_183 = arith.constant 0.000000e+00 : f32
    %178 = vector.broadcast %cst_183 : f32 to vector<1x32xf32>
    %179 = arith.maximumf %177, %178 : vector<1x32xf32>
    %c0_184 = arith.constant 0 : index
    %c0_185 = arith.constant 0 : index
    %180 = vector.load %arg13[%c0_184, %c0_185] : memref<32x2xf32, #tpu.memory_space<vmem>>, vector<32x2xf32>
    %cst_186 = arith.constant dense<0.000000e+00> : vector<1x2xf32>
    %181 = tpu.matmul %179, %180, %cst_186 {dimension_numbers = #tpu.dot_dimension_numbers<[1], [0], [0], [1], [0, 0, 1, 1], [], []>} : vector<1x32xf32>, vector<32x2xf32>, vector<1x2xf32> -> vector<1x2xf32>
    %c0_187 = arith.constant 0 : index
    %c0_188 = arith.constant 0 : index
    %182 = vector.load %arg14[%c0_187, %c0_188] : memref<1x2xf32, #tpu.memory_space<vmem>>, vector<1x2xf32>
    %183 = arith.addf %181, %182 : vector<1x2xf32>
    %c0_189 = arith.constant 0 : index
    %c0_190 = arith.constant 0 : index
    %c0_191 = arith.constant 0 : index
    %184 = vector.load %arg15[%c0_189, %c0_190, %c0_191] : memref<1x1x2xf32, #tpu.memory_space<vmem>>, vector<1x1x2xf32>
    %185 = vector.shape_cast %184 : vector<1x1x2xf32> to vector<1x2xf32>
    %186 = vector.shape_cast %183 : vector<1x2xf32> to vector<1x1x2xf32>
    tpu.vector_store %arg15[%c0_189, %c0_190, %c0_191], %186 {strides = array<i32>} : memref<1x1x2xf32, #tpu.memory_space<vmem>>, vector<1x1x2xf32>,
    return
  }
  func.func @transform_0(%arg0: i32) -> (i32, i32, i32) {
    %c0_i32 = arith.constant 0 : i32
    %c0_i32_0 = arith.constant 0 : i32
    %c0_i32_1 = arith.constant 0 : i32
    return %arg0, %c0_i32, %c0_i32_0 : i32, i32, i32
  }
  func.func @transform_1(%arg0: i32) -> (i32, i32, i32) {
    %c0_i32 = arith.constant 0 : i32
    %c0_i32_0 = arith.constant 0 : i32
    %c0_i32_1 = arith.constant 0 : i32
    %c0_i32_2 = arith.constant 0 : i32
    return %c0_i32, %c0_i32_0, %c0_i32_1 : i32, i32, i32
  }
  func.func @transform_2(%arg0: i32) -> (i32, i32, i32) {
    %c0_i32 = arith.constant 0 : i32
    %c0_i32_0 = arith.constant 0 : i32
    %c0_i32_1 = arith.constant 0 : i32
    %c0_i32_2 = arith.constant 0 : i32
    return %c0_i32, %c0_i32_0, %c0_i32_1 : i32, i32, i32
  }
  func.func @transform_3(%arg0: i32) -> (i32, i32, i32) {
    %c0_i32 = arith.constant 0 : i32
    %c0_i32_0 = arith.constant 0 : i32
    %c0_i32_1 = arith.constant 0 : i32
    %c0_i32_2 = arith.constant 0 : i32
    return %c0_i32, %c0_i32_0, %c0_i32_1 : i32, i32, i32
  }
  func.func @transform_4(%arg0: i32) -> (i32, i32) {
    %c0_i32 = arith.constant 0 : i32
    %c0_i32_0 = arith.constant 0 : i32
    %c0_i32_1 = arith.constant 0 : i32
    return %c0_i32, %c0_i32_0 : i32, i32
  }
  func.func @transform_5(%arg0: i32) -> (i32, i32, i32) {
    %c0_i32 = arith.constant 0 : i32
    %c0_i32_0 = arith.constant 0 : i32
    %c0_i32_1 = arith.constant 0 : i32
    %c0_i32_2 = arith.constant 0 : i32
    return %c0_i32, %c0_i32_0, %c0_i32_1 : i32, i32, i32
  }
  func.func @transform_6(%arg0: i32) -> (i32, i32, i32) {
    %c0_i32 = arith.constant 0 : i32
    %c0_i32_0 = arith.constant 0 : i32
    %c0_i32_1 = arith.constant 0 : i32
    %c0_i32_2 = arith.constant 0 : i32
    return %c0_i32, %c0_i32_0, %c0_i32_1 : i32, i32, i32
  }
  func.func @transform_7(%arg0: i32) -> (i32, i32) {
    %c0_i32 = arith.constant 0 : i32
    %c0_i32_0 = arith.constant 0 : i32
    %c0_i32_1 = arith.constant 0 : i32
    return %c0_i32, %c0_i32_0 : i32, i32
  }
  func.func @transform_8(%arg0: i32) -> (i32, i32, i32) {
    %c0_i32 = arith.constant 0 : i32
    %c0_i32_0 = arith.constant 0 : i32
    %c0_i32_1 = arith.constant 0 : i32
    %c0_i32_2 = arith.constant 0 : i32
    return %c0_i32, %c0_i32_0, %c0_i32_1 : i32, i32, i32
  }
  func.func @transform_9(%arg0: i32) -> (i32, i32) {
    %c0_i32 = arith.constant 0 : i32
    %c0_i32_0 = arith.constant 0 : i32
    %c0_i32_1 = arith.constant 0 : i32
    return %c0_i32, %c0_i32_0 : i32, i32
  }
  func.func @transform_10(%arg0: i32) -> (i32, i32) {
    %c0_i32 = arith.constant 0 : i32
    %c0_i32_0 = arith.constant 0 : i32
    %c0_i32_1 = arith.constant 0 : i32
    return %c0_i32, %c0_i32_0 : i32, i32
  }
  func.func @transform_11(%arg0: i32) -> (i32, i32) {
    %c0_i32 = arith.constant 0 : i32
    %c0_i32_0 = arith.constant 0 : i32
    %c0_i32_1 = arith.constant 0 : i32
    return %c0_i32, %c0_i32_0 : i32, i32
  }
  func.func @transform_12(%arg0: i32) -> (i32, i32) {
    %c0_i32 = arith.constant 0 : i32
    %c0_i32_0 = arith.constant 0 : i32
    %c0_i32_1 = arith.constant 0 : i32
    return %c0_i32, %c0_i32_0 : i32, i32
  }
  func.func @transform_13(%arg0: i32) -> (i32, i32) {
    %c0_i32 = arith.constant 0 : i32
    %c0_i32_0 = arith.constant 0 : i32
    %c0_i32_1 = arith.constant 0 : i32
    return %c0_i32, %c0_i32_0 : i32, i32
  }
  func.func @transform_14(%arg0: i32) -> (i32, i32, i32) {
    %c0_i32 = arith.constant 0 : i32
    %c0_i32_0 = arith.constant 0 : i32
    %c0_i32_1 = arith.constant 0 : i32
    return %arg0, %c0_i32, %c0_i32_0 : i32, i32, i32
  }
}

</mosaic_0001>

<bundles_post_ra>
// kernel: maml_base_forward.1
= control target key start
LH: loop header
LB: loop body
LE: loop exit
PB: predicated region body
PF: predicated region fallthrough
CT: control target
= control target key end

     0   :  { %19 = vsyncpa [#allocation3], 0  ;;  %s3705_s0 = inlined_call_operand.vmem [shape: f32[2,32,256], index: 0, kind: input, shape index: {}]   ;;  %s3706_s1 = inlined_call_operand.vmem [shape: f32[4,256,64], index: 1, kind: input, shape index: {}]   ;;  %s3707_s2 = inlined_call_operand.vmem [shape: f32[9,64,16], index: 2, kind: input, shape index: {}]   ;;  %s3708_s3 = inlined_call_operand.vmem [shape: f32[9,8,32], index: 3, kind: input, shape index: {}]   ;;  %s3709_s4 = inlined_call_operand.vmem [shape: f32[8,1], index: 4, kind: input, shape index: {}]   ;;  %s3710_s5 = inlined_call_operand.vmem [shape: f32[9,16,4], index: 5, kind: input, shape index: {}]   ;;  %s3711_s6 = inlined_call_operand.vmem [shape: f32[9,4,8], index: 6, kind: input, shape index: {}]   ;;  %s3712_s7 = inlined_call_operand.vmem [shape: f32[4,1], index: 7, kind: input, shape index: {}]   ;;  %s3713_s8 = inlined_call_operand.vmem [shape: f32[4,4,128], index: 8, kind: input, shape index: {}]   ;;  %s3714_s9 = inlined_call_operand.vmem [shape: f32[1,128], index: 9, kind: input, shape index: {}]   ;;  %s3715_s10 = inlined_call_operand.vmem [shape: f32[128,32], index: 10, kind: input, shape index: {}]   ;;  %s3716_s11 = inlined_call_operand.vmem [shape: f32[1,32], index: 11, kind: input, shape index: {}]   ;;  %s3717_s12 = inlined_call_operand.vmem [shape: f32[32,2], index: 12, kind: input, shape index: {}]   ;;  %s3718_s13 = inlined_call_operand.vmem [shape: f32[1,2], index: 13, kind: input, shape index: {}]   ;;  %s3719_s14 = inlined_call_operand.hbm [shape: f32[2,1,2], index: 14, kind: output, shape index: {}]  }
   0x1   :  { %21 = vsyncpa [#allocation3 + $0x1], 0  ;;  %s2603_s29 = smov 0   ;;  %s2605_s30 = smov 0  }
   0x2   :  { %s2607_s15 = smov 0   ;;  %s2609_s16 = smov 0  }
   0x3 LB: > { %3725 = sst [smem:[#allocation5_spill]] %s2513_s29  ;;  %s2624_s17 = sadd.s32 4294967295, %s2525_s16   ;;  %s2525_s16 = sphi %s2609_s16, %s3734_s16   ;;  %s2521_s15 = sphi %s2607_s15, %s3736_s15   ;;  %s2517_s30 = sphi %s2605_s30, %s3738_s30   ;;  %s2513_s29 = sphi %s2603_s29, %s3737_s29  }
   0x4   : > { %3726 = sst [smem:[#allocation6_spill]] %s2521_s15  ;;  %s2146_s18 = sadd.s32 4294967294, %s2525_s16  }
   0x5   : > { %s2628_s19 = sadd.s32 1, %s2525_s16   ;;  %s333_s20 = sadd.s32 1, %s2521_s15 }
   0x6   : > { %3727 = sst [smem:[#allocation7_spill]] %s2628_s19  ;;  %s330_s21 = ssub.s32 %s2525_s16, %s2628_s19 }
   0x7   : > { %p343_p0 = scmp.ne.s32.totalorder %s2521_s15, %s2517_s30  ;;  %p331_p1 = scmp.eq.s32.totalorder %s330_s21, 0 }
   0x8   : > { %p344_p2 = scmp.eq.s32.totalorder %s2624_s17, 1  ;;  %p349_p3 = scmp.ne.s32.totalorder %s2517_s30, %s2513_s29 }
   0x9   : > { %p350_p4 = scmp.eq.s32.totalorder %s2146_s18, 1  ;;  %p2149_p7 = scmp.ge.s32.totalorder %s2525_s16, 1 }
   0xa   : > { %s2639_s22 = scalar_select %p331_p1, %s2521_s15, %s333_s20  }
   0xb   : > { %p2641_p5 = por %p344_p2, %p343_p0  ;;  %p2645_p6 = por %p350_p4, %p349_p3 }
   0xc   : > { %3728 = sst [smem:[#allocation8_spill]] %s2639_s22  ;;  %p415_p8 = scmp.lt.s32.totalorder %s2525_s16, 3 }
   0xd   : > { %s3730_s24 = scalar_select %p2645_p6, 1, 0 }
   0xe   : > { %p416_p9 = pnand %p2149_p7, %p415_p8 }
   0xf   : > { %3731 = sst [smem:[#allocation9_spill]] %s3730_s24  ;;  %p460_p10 = scmp.lt.s32.totalorder (!%p416_p9), %s2624_s17, 1 }
  0x10   : > { %419 = sbr.rel (%p416_p9) target bundleno = 1773 (0x6ed), region = 76  ;;  %s458_s25 = sand.u32 (!%p416_p9), 1, %s2517_s30  }
  0x11   : > { %s2087_s24 = scalar_lea.hbm (!%p416_p9), %s3719_s14, %s2624_s17  ;;  %s459_s20 = scalar_lea.vmem (!%p416_p9), [#allocation2], %s458_s25 }
  0x12   : > { %s2089_s22 = sshll.u32 (!%p416_p9), %s459_s20, 4  ;;  %s2091_s21 = sshll.u32 (!%p416_p9), %s2087_s24, 4  ;;  %s2090_s22 = int_to_ptr.vmem [resolvable:$true] %s2089_s22  ;;  %s2092_s21 = int_to_ptr.hbm [resolvable:$true] %s2091_s21 }
  0x13   : > { %s2079_s15 = scalar_lea.sflag (!%p416_p9), [#allocation3], %s458_s25  ;;  %s2477_s19 = sshra.s32 (!%p416_p9), %s2092_s21, 4  ;;  %s2478_s19 = int_to_ptr.hbm [resolvable:$true] %s2477_s19 }
  0x14   : > { %s2483_s27 = scalar_lea.hbm (!%p416_p9), %s3719_s14, 2  ;;  %p2484_p0 = scmp.lt.s32.totalorder (!%p416_p9), %s2478_s19, %s3719_s14 }
  0x15   : > { %v2167_v0 = vld [vmem:[%s3706_s1 + $0x178] sm:$0xff]  ;;  %v2166_v2 = vld [vmem:[%s3706_s1 + $0x170] sm:$0xff]  ;;  %v2165_v4 = vld [vmem:[%s3706_s1 + $0x168] sm:$0xff]  ;;  %s2781_s18 = scalar_select %p460_p10, %s2624_s17, 1  ;;  %vm856_vm0 = vcmask 523264   ;;  %vm939_vm1 = vcmask 261120  }
  0x16   : > { %v2183_v1 = vld [vmem:[%s3706_s1 + $0x1f8] sm:$0xff]  ;;  %596 = vmatpush.msra.mxu2 %v2167_v0  ;;  %v2182_v3 = vld [vmem:[%s3706_s1 + $0x1f0] sm:$0xff]  ;;  %v2181_v5 = vld [vmem:[%s3706_s1 + $0x1e8] sm:$0xff]  ;;  %vm1444_vm2 = vcmask 130048   ;;  %vm1494_vm3 = vcmask 64512   ;;  %vm1900_vm4 = vcmask 1043456  }
  0x17   : > { %625 = vmatpush.msra.mxu3 %v2183_v1  ;;  %v488_v6 = vld [vmem:[%s3706_s1 + $0x78] sm:$0xff]  ;;  %v487_v8 = vld [vmem:[%s3706_s1 + $0x70] sm:$0xff]  ;;  %v2164_v10 = vld [vmem:[%s3706_s1 + $0x160] sm:$0xff]  ;;  %s2421_s26 = sshll.u32 %s2781_s18, 6  ;;  %vm1897_vm5 = vcmask 31744   ;;  %vm2076_vm6 = vcmask 8192  }
  0x18   : > { %v504_v7 = vld [vmem:[%s3706_s1 + $0xf8] sm:$0xff]  ;;  %597 = vmatpush.msra.mxu2 %v2166_v2  ;;  %v503_v9 = vld [vmem:[%s3706_s1 + $0xf0] sm:$0xff]  ;;  %505 = vmatpush.msra.mxu0 %v488_v6  ;;  %v2180_v11 = vld [vmem:[%s3706_s1 + $0x1e0] sm:$0xff]  ;;  %s2829_s29 = scalar_lea.vmem %s3705_s0, %s2421_s26  ;;  %s2479_s18 = scalar_lea.hbm %s2478_s19, 1 }
  0x19   : > { %626 = vmatpush.msra.mxu3 %v2182_v3  ;;  %534 = vmatpush.msra.mxu1 %v504_v7  ;;  %v486_v12 = vld [vmem:[%s3706_s1 + $0x68] sm:$0xff]  ;;  %v2163_v14 = vld [vmem:[%s3706_s1 + $0x158] sm:$0xff]  ;;  %v485_v16 = vld [vmem:[%s3706_s1 + $0x60] sm:$0xff]  ;;  %p2480_p11 = scmp.ne.s32.totalorder %s2478_s19, %s2479_s18  ;;  %p2485_p1 = scmp.lt.s32.totalorder %s2483_s27, %s2479_s18 }
  0x1a   : > { %598 = vmatpush.msra.mxu2 %v2165_v4  ;;  %v502_v13 = vld [vmem:[%s3706_s1 + $0xe8] sm:$0xff]  ;;  %506 = vmatpush.msra.mxu0 %v487_v8  ;;  %v2179_v15 = vld [vmem:[%s3706_s1 + $0x1d8] sm:$0xff]  ;;  %v501_v17 = vld [vmem:[%s3706_s1 + $0xe0] sm:$0xff] }
  0x1b   : > { %627 = vmatpush.msra.mxu3 %v2181_v5  ;;  %535 = vmatpush.msra.mxu1 %v503_v9  ;;  %v2162_v18 = vld [vmem:[%s3706_s1 + $0x150] sm:$0xff]  ;;  %v484_v20 = vld [vmem:[%s3706_s1 + $0x58] sm:$0xff]  ;;  %v2161_v22 = vld [vmem:[%s3706_s1 + $0x148] sm:$0xff]  ;;  %p2481_p12 = pnand %p2480_p11, %p2641_p5  ;;  %p2486_p2 = por %p2485_p1, %p2484_p0 }
  0x1c   : > { %599 = vmatpush.msra.mxu2 %v2164_v10  ;;  %507 = vmatpush.msra.mxu0 %v486_v12  ;;  %v2178_v19 = vld [vmem:[%s3706_s1 + $0x1d0] sm:$0xff]  ;;  %v500_v21 = vld [vmem:[%s3706_s1 + $0xd8] sm:$0xff]  ;;  %v2177_v23 = vld [vmem:[%s3706_s1 + $0x1c8] sm:$0xff] }
  0x1d   : > { %628 = vmatpush.msra.mxu3 %v2180_v11  ;;  %536 = vmatpush.msra.mxu1 %v502_v13  ;;  %v483_v24 = vld [vmem:[%s3706_s1 + $0x50] sm:$0xff]  ;;  %v2160_v26 = vld [vmem:[%s3706_s1 + $0x140] sm:$0xff]  ;;  %v482_v28 = vld [vmem:[%s3706_s1 + $0x48] sm:$0xff]  ;;  %p2482_p13 = pneg %p2481_p12 }
  0x1e   : > { %600 = vmatpush.msra.mxu2 %v2163_v14  ;;  %508 = vmatpush.msra.mxu0 %v485_v16  ;;  %v499_v25 = vld [vmem:[%s3706_s1 + $0xd0] sm:$0xff]  ;;  %v2176_v27 = vld [vmem:[%s3706_s1 + $0x1c0] sm:$0xff]  ;;  %v498_v29 = vld [vmem:[%s3706_s1 + $0xc8] sm:$0xff] }
  0x1f   : > { %629 = vmatpush.msra.mxu3 %v2179_v15  ;;  %537 = vmatpush.msra.mxu1 %v501_v17  ;;  %v2159_v30 = vld [vmem:[%s3706_s1 + $0x138] sm:$0xff]  ;;  %v481_v32 = vld [vmem:[%s3706_s1 + $0x40] sm:$0xff]  ;;  %v2158_v34 = vld [vmem:[%s3706_s1 + $0x130] sm:$0xff]  ;;  %p2487_p3 = pnand %p2486_p2, %p2482_p13 }
  0x20   : > { %601 = vmatpush.msra.mxu2 %v2162_v18  ;;  %509 = vmatpush.msra.mxu0 %v484_v20  ;;  %v2175_v31 = vld [vmem:[%s3706_s1 + $0x1b8] sm:$0xff]  ;;  %v497_v33 = vld [vmem:[%s3706_s1 + $0xc0] sm:$0xff]  ;;  %v2174_v35 = vld [vmem:[%s3706_s1 + $0x1b0] sm:$0xff] }
  0x21   : > { %630 = vmatpush.msra.mxu3 %v2178_v19  ;;  %538 = vmatpush.msra.mxu1 %v500_v21  ;;  %v480_v36 = vld [vmem:[%s3706_s1 + $0x38] sm:$0xff]  ;;  %v2157_v38 = vld [vmem:[%s3706_s1 + $0x128] sm:$0xff]  ;;  %v479_v40 = vld [vmem:[%s3706_s1 + $0x30] sm:$0xff] }
  0x22   : > { %602 = vmatpush.msra.mxu2 %v2161_v22  ;;  %510 = vmatpush.msra.mxu0 %v483_v24  ;;  %v496_v37 = vld [vmem:[%s3706_s1 + $0xb8] sm:$0xff]  ;;  %v2173_v39 = vld [vmem:[%s3706_s1 + $0x1a8] sm:$0xff]  ;;  %v495_v41 = vld [vmem:[%s3706_s1 + $0xb0] sm:$0xff] }
  0x23   : > { %631 = vmatpush.msra.mxu3 %v2177_v23  ;;  %539 = vmatpush.msra.mxu1 %v499_v25  ;;  %v2156_v42 = vld [vmem:[%s3706_s1 + $0x120] sm:$0xff]  ;;  %v478_v44 = vld [vmem:[%s3706_s1 + $0x28] sm:$0xff]  ;;  %v2155_v46 = vld [vmem:[%s3706_s1 + $0x118] sm:$0xff] }
  0x24   : > { %603 = vmatpush.msra.mxu2 %v2160_v26  ;;  %511 = vmatpush.msra.mxu0 %v482_v28  ;;  %v2172_v43 = vld [vmem:[%s3706_s1 + $0x1a0] sm:$0xff]  ;;  %v494_v45 = vld [vmem:[%s3706_s1 + $0xa8] sm:$0xff]  ;;  %v2171_v47 = vld [vmem:[%s3706_s1 + $0x198] sm:$0xff] }
  0x25   : > { %632 = vmatpush.msra.mxu3 %v2176_v27  ;;  %540 = vmatpush.msra.mxu1 %v498_v29  ;;  %v477_v48 = vld [vmem:[%s3706_s1 + $0x20] sm:$0xff]  ;;  %v2154_v50 = vld [vmem:[%s3706_s1 + $0x110] sm:$0xff]  ;;  %v476_v52 = vld [vmem:[%s3706_s1 + $0x18] sm:$0xff] }
  0x26   : > { %604 = vmatpush.msra.mxu2 %v2159_v30  ;;  %512 = vmatpush.msra.mxu0 %v481_v32  ;;  %v493_v49 = vld [vmem:[%s3706_s1 + $0xa0] sm:$0xff]  ;;  %v2170_v51 = vld [vmem:[%s3706_s1 + $0x190] sm:$0xff]  ;;  %v492_v53 = vld [vmem:[%s3706_s1 + $0x98] sm:$0xff] }
  0x27   : > { %633 = vmatpush.msra.mxu3 %v2175_v31  ;;  %541 = vmatpush.msra.mxu1 %v497_v33  ;;  %v2153_v54 = vld [vmem:[%s3706_s1 + $0x108] sm:$0xff]  ;;  %v475_v56 = vld [vmem:[%s3706_s1 + $0x10] sm:$0xff]  ;;  %v2152_v58 = vld [vmem:[%s3706_s1 + $0x100] sm:$0xff] }
  0x28   : > { %605 = vmatpush.msra.mxu2 %v2158_v34  ;;  %513 = vmatpush.msra.mxu0 %v480_v36  ;;  %v2169_v55 = vld [vmem:[%s3706_s1 + $0x188] sm:$0xff]  ;;  %v491_v57 = vld [vmem:[%s3706_s1 + $0x90] sm:$0xff]  ;;  %v2168_v59 = vld [vmem:[%s3706_s1 + $0x180] sm:$0xff] }
  0x29   : > { %634 = vmatpush.msra.mxu3 %v2174_v35  ;;  %542 = vmatpush.msra.mxu1 %v496_v37  ;;  %v2844_v60 = vld [vmem:[%s2829_s29] sm:$0xff]  ;;  %v2847_v61 = vld [vmem:[%s2829_s29 + $0x8] sm:$0xff]  ;;  %v2231_v62 = vld [vmem:[%s3706_s1 + $0x378] sm:$0xff] }
  0x2a   : > { %606 = vmatpush.msra.mxu2 %v2157_v38  ;;  %514 = vmatpush.msra.mxu0 %v479_v40  ;;  %v2247_v63 = vld [vmem:[%s3706_s1 + $0x3f8] sm:$0xff]  ;;  %v474_v0 = vld [vmem:[%s3706_s1 + $0x8] sm:$0xff]  ;;  %v2230_v2 = vld [vmem:[%s3706_s1 + $0x370] sm:$0xff] }
  0x2b   : > { %635 = vmatpush.msra.mxu3 %v2173_v39  ;;  %543 = vmatpush.msra.mxu1 %v495_v41  ;;  %v490_v1 = vld [vmem:[%s3706_s1 + $0x88] sm:$0xff]  ;;  %v2246_v3 = vld [vmem:[%s3706_s1 + $0x3f0] sm:$0xff]  ;;  %v473_v4 = vld [vmem:[%s3706_s1] sm:$0xff] }
  0x2c   : > { %607 = vmatpush.msra.mxu2 %v2156_v42  ;;  %515 = vmatpush.msra.mxu0 %v478_v44  ;;  %v489_v5 = vld [vmem:[%s3706_s1 + $0x80] sm:$0xff]  ;;  %v2229_v6 = vld [vmem:[%s3706_s1 + $0x368] sm:$0xff]  ;;  %v2199_v8 = vld [vmem:[%s3706_s1 + $0x278] sm:$0xff] }
  0x2d   : > { %636 = vmatpush.msra.mxu3 %v2172_v43  ;;  %544 = vmatpush.msra.mxu1 %v494_v45  ;;  %v2245_v7 = vld [vmem:[%s3706_s1 + $0x3e8] sm:$0xff]  ;;  %v2215_v9 = vld [vmem:[%s3706_s1 + $0x2f8] sm:$0xff]  ;;  %v2228_v10 = vld [vmem:[%s3706_s1 + $0x360] sm:$0xff] }
  0x2e   : > { %608 = vmatpush.msra.mxu2 %v2155_v46  ;;  %516 = vmatpush.msra.mxu0 %v477_v48  ;;  %v2244_v11 = vld [vmem:[%s3706_s1 + $0x3e0] sm:$0xff]  ;;  %v2896_v12 = vld [vmem:[%s2829_s29 + $0x10] sm:$0xff]  ;;  %v2899_v13 = vld [vmem:[%s2829_s29 + $0x18] sm:$0xff] }
  0x2f   : > { %637 = vmatpush.msra.mxu3 %v2171_v47  ;;  %545 = vmatpush.msra.mxu1 %v493_v49  ;;  %v2198_v14 = vld [vmem:[%s3706_s1 + $0x270] sm:$0xff]  ;;  %v2227_v16 = vld [vmem:[%s3706_s1 + $0x358] sm:$0xff]  ;;  %v2197_v18 = vld [vmem:[%s3706_s1 + $0x268] sm:$0xff] }
  0x30   : > { %609 = vmatpush.msra.mxu2 %v2154_v50  ;;  %517 = vmatpush.msra.mxu0 %v476_v52  ;;  %v2214_v15 = vld [vmem:[%s3706_s1 + $0x2f0] sm:$0xff]  ;;  %v2243_v17 = vld [vmem:[%s3706_s1 + $0x3d8] sm:$0xff]  ;;  %v2213_v19 = vld [vmem:[%s3706_s1 + $0x2e8] sm:$0xff] }
  0x31   : > { %638 = vmatpush.msra.mxu3 %v2170_v51  ;;  %546 = vmatpush.msra.mxu1 %v492_v53  ;;  %v2226_v20 = vld [vmem:[%s3706_s1 + $0x350] sm:$0xff]  ;;  %v2196_v22 = vld [vmem:[%s3706_s1 + $0x260] sm:$0xff]  ;;  %v2225_v24 = vld [vmem:[%s3706_s1 + $0x348] sm:$0xff] }
  0x32   : > { %610 = vmatpush.msra.mxu2 %v2153_v54  ;;  %518 = vmatpush.msra.mxu0 %v475_v56  ;;  %v2242_v21 = vld [vmem:[%s3706_s1 + $0x3d0] sm:$0xff]  ;;  %v2212_v23 = vld [vmem:[%s3706_s1 + $0x2e0] sm:$0xff]  ;;  %v2241_v25 = vld [vmem:[%s3706_s1 + $0x3c8] sm:$0xff] }
  0x33   : > { %639 = vmatpush.msra.mxu3 %v2169_v55  ;;  %547 = vmatpush.msra.mxu1 %v491_v57  ;;  %v2195_v26 = vld [vmem:[%s3706_s1 + $0x258] sm:$0xff]  ;;  %v2224_v28 = vld [vmem:[%s3706_s1 + $0x340] sm:$0xff]  ;;  %v2957_v31 = vld [vmem:[%s2829_s29 + $0x28] sm:$0xff] }
  0x34   : > { %611 = vmatpush.msra.mxu2 %v2152_v58  ;;  %519 = vmatpush.msra.mxu0 %v474_v0  ;;  %v2211_v27 = vld [vmem:[%s3706_s1 + $0x2d8] sm:$0xff]  ;;  %v2240_v29 = vld [vmem:[%s3706_s1 + $0x3c0] sm:$0xff]  ;;  %v2194_v32 = vld [vmem:[%s3706_s1 + $0x250] sm:$0xff] }
  0x35   : > { %640 = vmatpush.msra.mxu3 %v2168_v59  ;;  %612 = vmatmul.f32.vlgmr.msra.gmra.mxu2 %v2844_v60  ;;  %v2954_v30 = vld [vmem:[%s2829_s29 + $0x20] sm:$0xff]  ;;  %v2210_v33 = vld [vmem:[%s3706_s1 + $0x2d0] sm:$0xff]  ;;  %v2223_v34 = vld [vmem:[%s3706_s1 + $0x338] sm:$0xff] }
  0x36   : > { %641 = vmatmul.f32.vlgmr.msra.gmra.mxu3 %v2847_v61  ;;  %778 = vmatpush.msrb.mxu2 %v2231_v62  ;;  %v2239_v35 = vld [vmem:[%s3706_s1 + $0x3b8] sm:$0xff]  ;;  %v2193_v36 = vld [vmem:[%s3706_s1 + $0x248] sm:$0xff]  ;;  %v2222_v38 = vld [vmem:[%s3706_s1 + $0x330] sm:$0xff] }
  0x37   : > { %807 = vmatpush.msrb.mxu3 %v2247_v63  ;;  %548 = vmatpush.msra.mxu1 %v490_v1  ;;  %v2209_v37 = vld [vmem:[%s3706_s1 + $0x2c8] sm:$0xff]  ;;  %v2238_v39 = vld [vmem:[%s3706_s1 + $0x3b0] sm:$0xff]  ;;  %v2192_v40 = vld [vmem:[%s3706_s1 + $0x240] sm:$0xff] }
  0x38   : > { %779 = vmatpush.msrb.mxu2 %v2230_v2  ;;  %520 = vmatpush.msra.mxu0 %v473_v4  ;;  %v2208_v41 = vld [vmem:[%s3706_s1 + $0x2c0] sm:$0xff]  ;;  %v2221_v42 = vld [vmem:[%s3706_s1 + $0x328] sm:$0xff]  ;;  %v2191_v44 = vld [vmem:[%s3706_s1 + $0x238] sm:$0xff] }
  0x39   : > { %808 = vmatpush.msrb.mxu3 %v2246_v3  ;;  %549 = vmatpush.msra.mxu1 %v489_v5  ;;  %v2237_v43 = vld [vmem:[%s3706_s1 + $0x3a8] sm:$0xff]  ;;  %v2207_v45 = vld [vmem:[%s3706_s1 + $0x2b8] sm:$0xff]  ;;  %v2220_v46 = vld [vmem:[%s3706_s1 + $0x320] sm:$0xff] }
  0x3a   : > { %780 = vmatpush.msrb.mxu2 %v2229_v6  ;;  %521 = vmatmul.f32.vlgmr.msra.gmra.mxu0 %v2844_v60  ;;  %v2236_v47 = vld [vmem:[%s3706_s1 + $0x3a0] sm:$0xff]  ;;  %v3012_v48 = vld [vmem:[%s2829_s29 + $0x30] sm:$0xff]  ;;  %v3015_v49 = vld [vmem:[%s2829_s29 + $0x38] sm:$0xff] }
  0x3b   : > { %809 = vmatpush.msrb.mxu3 %v2245_v7  ;;  %550 = vmatmul.f32.vlgmr.msra.gmra.mxu1 %v2847_v61  ;;  %v2190_v50 = vld [vmem:[%s3706_s1 + $0x230] sm:$0xff]  ;;  %v2219_v52 = vld [vmem:[%s3706_s1 + $0x318] sm:$0xff]  ;;  %v2189_v54 = vld [vmem:[%s3706_s1 + $0x228] sm:$0xff] }
  0x3c   : > { %687 = vmatpush.msrb.mxu0 %v2199_v8  ;;  %716 = vmatpush.msrb.mxu1 %v2215_v9  ;;  %v2206_v51 = vld [vmem:[%s3706_s1 + $0x2b0] sm:$0xff]  ;;  %v2235_v53 = vld [vmem:[%s3706_s1 + $0x398] sm:$0xff]  ;;  %v2205_v55 = vld [vmem:[%s3706_s1 + $0x2a8] sm:$0xff] }
  0x3d   : > { %781 = vmatpush.msrb.mxu2 %v2228_v10  ;;  %810 = vmatpush.msrb.mxu3 %v2244_v11  ;;  %v2218_v56 = vld [vmem:[%s3706_s1 + $0x310] sm:$0xff]  ;;  %v2188_v58 = vld [vmem:[%s3706_s1 + $0x220] sm:$0xff]  ;;  %v2217_v62 = vld [vmem:[%s3706_s1 + $0x308] sm:$0xff] }
  0x3e   : > { %615 = vmatmul.f32.gmra.mxu2 %v2896_v12  ;;  %644 = vmatmul.f32.gmra.mxu3 %v2899_v13  ;;  %v2234_v57 = vld [vmem:[%s3706_s1 + $0x390] sm:$0xff]  ;;  %v2204_v59 = vld [vmem:[%s3706_s1 + $0x2a0] sm:$0xff]  ;;  %v2233_v63 = vld [vmem:[%s3706_s1 + $0x388] sm:$0xff] }
  0x3f   : > { %688 = vmatpush.msrb.mxu0 %v2198_v14  ;;  %717 = vmatpush.msrb.mxu1 %v2214_v15  ;;  %v2187_v0 = vld [vmem:[%s3706_s1 + $0x218] sm:$0xff]  ;;  %v2216_v2 = vld [vmem:[%s3706_s1 + $0x300] sm:$0xff]  ;;  %v2186_v4 = vld [vmem:[%s3706_s1 + $0x210] sm:$0xff] }
  0x40   : > { %782 = vmatpush.msrb.mxu2 %v2227_v16  ;;  %811 = vmatpush.msrb.mxu3 %v2243_v17  ;;  %v2203_v1 = vld [vmem:[%s3706_s1 + $0x298] sm:$0xff]  ;;  %v2232_v3 = vld [vmem:[%s3706_s1 + $0x380] sm:$0xff]  ;;  %v2202_v5 = vld [vmem:[%s3706_s1 + $0x290] sm:$0xff] }
  0x41   : > { %689 = vmatpush.msrb.mxu0 %v2197_v18  ;;  %718 = vmatpush.msrb.mxu1 %v2213_v19  ;;  %v2185_v6 = vld [vmem:[%s3706_s1 + $0x208] sm:$0xff]  ;;  %v2184_v8 = vld [vmem:[%s3706_s1 + $0x200] sm:$0xff]  ;;  %v2274_v10 = vld [vmem:[%s3707_s2 + $0xb8] sm:$0xff] }
  0x42   : > { %783 = vmatpush.msrb.mxu2 %v2226_v20  ;;  %812 = vmatpush.msrb.mxu3 %v2242_v21  ;;  %v2201_v7 = vld [vmem:[%s3706_s1 + $0x288] sm:$0xff]  ;;  %v2200_v9 = vld [vmem:[%s3706_s1 + $0x280] sm:$0xff]  ;;  %v2258_v14 = vld [vmem:[%s3707_s2 + $0x70] sm:$0xff] }
  0x43   : > { %690 = vmatpush.msrb.mxu0 %v2196_v22  ;;  %719 = vmatpush.msrb.mxu1 %v2212_v23  ;;  %v2273_v15 = vld [vmem:[%s3707_s2 + $0xb0] sm:$0xff]  ;;  %v853_v18 = vld [vmem:[%s3707_s2 + $0x28] sm:$0xff]  ;;  %v852_v21 = vld [vmem:[%s3707_s2 + $0x20] sm:$0xff] }
  0x44   : > { %784 = vmatpush.msrb.mxu2 %v2225_v24  ;;  %813 = vmatpush.msrb.mxu3 %v2241_v25  ;;  %v2257_v19 = vld [vmem:[%s3707_s2 + $0x68] sm:$0xff]  ;;  %v2256_v22 = vld [vmem:[%s3707_s2 + $0x60] sm:$0xff]  ;;  %v851_v24 = vld [vmem:[%s3707_s2 + $0x18] sm:$0xff] }
  0x45   : > { %524 = vmatmul.f32.gmra.mxu0 %v2896_v12  ;;  %553 = vmatmul.f32.gmra.mxu1 %v2899_v13  ;;  %v2272_v20 = vld [vmem:[%s3707_s2 + $0xa8] sm:$0xff]  ;;  %v2271_v23 = vld [vmem:[%s3707_s2 + $0xa0] sm:$0xff]  ;;  %v2255_v25 = vld [vmem:[%s3707_s2 + $0x58] sm:$0xff] }
  0x46   : > { %691 = vmatpush.msrb.mxu0 %v2195_v26  ;;  %720 = vmatpush.msrb.mxu1 %v2211_v27  ;;  %v2270_v26 = vld [vmem:[%s3707_s2 + $0x98] sm:$0xff] }
  0x47   : > { %785 = vmatpush.msrb.mxu2 %v2224_v28  ;;  %814 = vmatpush.msrb.mxu3 %v2240_v29  ;;  %v850_v29 = vld [vmem:[%s3707_s2 + $0x10] sm:$0xff] }
  0x48   : > { %618 = vmatmul.f32.gmra.mxu2 %v2954_v30  ;;  %647 = vmatmul.f32.gmra.mxu3 %v2957_v31 }
  0x49   : > { %692 = vmatpush.msrb.mxu0 %v2194_v32  ;;  %721 = vmatpush.msrb.mxu1 %v2210_v33 }
  0x4a   : > { %786 = vmatpush.msrb.mxu2 %v2223_v34  ;;  %815 = vmatpush.msrb.mxu3 %v2239_v35  ;;  %v849_v34 = vld [vmem:[%s3707_s2 + $0x8] sm:$0xff] }
  0x4b   : > { %693 = vmatpush.msrb.mxu0 %v2193_v36  ;;  %722 = vmatpush.msrb.mxu1 %v2209_v37  ;;  %v2253_v35 = vld [vmem:[%s3707_s2 + $0x48] sm:$0xff]  ;;  %v848_v37 = vld [vmem:[%s3707_s2] sm:$0xff] }
  0x4c   : > { %787 = vmatpush.msrb.mxu2 %v2222_v38  ;;  %816 = vmatpush.msrb.mxu3 %v2238_v39  ;;  %v2268_v36 = vld [vmem:[%s3707_s2 + $0x88] sm:$0xff]  ;;  %v2252_v38 = vld [vmem:[%s3707_s2 + $0x40] sm:$0xff] }
  0x4d   : > { %694 = vmatpush.msrb.mxu0 %v2192_v40  ;;  %723 = vmatpush.msrb.mxu1 %v2208_v41  ;;  %v2267_v39 = vld [vmem:[%s3707_s2 + $0x80] sm:$0xff] }
  0x4e   : > { %788 = vmatpush.msrb.mxu2 %v2221_v42  ;;  %817 = vmatpush.msrb.mxu3 %v2237_v43 }
  0x4f   : > { %527 = vmatmul.f32.gmra.mxu0 %v2954_v30  ;;  %556 = vmatmul.f32.gmra.mxu1 %v2957_v31 }
  0x50   : > { %695 = vmatpush.msrb.mxu0 %v2191_v44  ;;  %724 = vmatpush.msrb.mxu1 %v2207_v45 }
  0x51   : > { %789 = vmatpush.msrb.mxu2 %v2220_v46  ;;  %818 = vmatpush.msrb.mxu3 %v2236_v47 }
  0x52   : > { %621 = vmatmul.f32.gmra.mxu2 %v3012_v48  ;;  %650 = vmatmul.f32.gmra.mxu3 %v3015_v49 }
  0x53   : > { %696 = vmatpush.msrb.mxu0 %v2190_v50  ;;  %725 = vmatpush.msrb.mxu1 %v2206_v51  ;;  %v2301_v50 = vld [vmem:[%s3707_s2 + $0x130] sm:$0xff] }
  0x54   : > { %790 = vmatpush.msrb.mxu2 %v2219_v52  ;;  %819 = vmatpush.msrb.mxu3 %v2235_v53  ;;  %v2315_v51 = vld [vmem:[%s3707_s2 + $0x170] sm:$0xff]  ;;  %v2300_v52 = vld [vmem:[%s3707_s2 + $0x128] sm:$0xff] }
  0x55   : > { %697 = vmatpush.msrb.mxu0 %v2189_v54  ;;  %726 = vmatpush.msrb.mxu1 %v2205_v55  ;;  %v2314_v53 = vld [vmem:[%s3707_s2 + $0x168] sm:$0xff]  ;;  %v2299_v54 = vld [vmem:[%s3707_s2 + $0x120] sm:$0xff] }
  0x56   : > { %791 = vmatpush.msrb.mxu2 %v2218_v56  ;;  %820 = vmatpush.msrb.mxu3 %v2234_v57  ;;  %v2313_v55 = vld [vmem:[%s3707_s2 + $0x160] sm:$0xff] }
  0x57   : > { %698 = vmatpush.msrb.mxu0 %v2188_v58  ;;  %727 = vmatpush.msrb.mxu1 %v2204_v59 }
  0x58   : > { %792 = vmatpush.msrb.mxu2 %v2217_v62  ;;  %821 = vmatpush.msrb.mxu3 %v2233_v63 }
  0x59   : > { %530 = vmatmul.f32.gmra.mxu0 %v3012_v48  ;;  %559 = vmatmul.f32.gmra.mxu1 %v3015_v49 }
  0x5a   : > { %699 = vmatpush.msrb.mxu0 %v2187_v0  ;;  %728 = vmatpush.msrb.mxu1 %v2203_v1  ;;  %v2298_v1 = vld [vmem:[%s3707_s2 + $0x118] sm:$0xff] }
  0x5b   : > { %793 = vmatpush.msrb.mxu2 %v2216_v2  ;;  %822 = vmatpush.msrb.mxu3 %v2232_v3  ;;  %v2312_v2 = vld [vmem:[%s3707_s2 + $0x158] sm:$0xff]  ;;  %v2297_v3 = vld [vmem:[%s3707_s2 + $0x110] sm:$0xff] }
  0x5c   : > { %794 = vmatmul.f32.vlgmr.msrb.gmra.mxu2 %v2844_v60  ;;  %823 = vmatmul.f32.vlgmr.msrb.gmra.mxu3 %v2847_v61 }
  0x5d   : > { %700 = vmatpush.msrb.mxu0 %v2186_v4  ;;  %729 = vmatpush.msrb.mxu1 %v2202_v5  ;;  %v2311_v5 = vld [vmem:[%s3707_s2 + $0x150] sm:$0xff] }
  0x5e   : > { %1003 = vmatpush.msra.mxu2 %v2274_v10  ;;  %v2309_v10 = vld [vmem:[%s3707_s2 + $0x140] sm:$0xff] }
  0x5f   : > { %701 = vmatpush.msrb.mxu0 %v2185_v6  ;;  %730 = vmatpush.msrb.mxu1 %v2201_v7  ;;  %v2296_v6 = vld [vmem:[%s3707_s2 + $0x108] sm:$0xff] }
  0x60   : > { %1004 = vmatpush.msra.mxu2 %v2273_v15  ;;  %v2310_v7 = vld [vmem:[%s3707_s2 + $0x148] sm:$0xff] }
  0x61   : > { %702 = vmatpush.msrb.mxu0 %v2184_v8  ;;  %731 = vmatpush.msrb.mxu1 %v2200_v9 }
  0x62   : > { %703 = vmatmul.f32.vlgmr.msrb.gmra.mxu0 %v2844_v60  ;;  %732 = vmatmul.f32.vlgmr.msrb.gmra.mxu1 %v2847_v61  ;;  %v855_v60 = vld [vmem:[%s3707_s2 + $0x38] sm:$0xff] }
  0x63   : > { %v2259_v61 = vld [vmem:[%s3707_s2 + $0x78] sm:$0xff]  ;;  %877 = vmatpush.msra.mxu0 %v855_v60  ;;  %1005 = vmatpush.msra.mxu2 %v2272_v20 }
  0x64   : > { %797 = vmatmul.f32.gmra.mxu2 %v2896_v12  ;;  %826 = vmatmul.f32.gmra.mxu3 %v2899_v13 }
  0x65   : > { %916 = vmatpush.msra.mxu1 %v2259_v61  ;;  %1006 = vmatpush.msra.mxu2 %v2271_v23  ;;  %v2295_v61 = vld [vmem:[%s3707_s2 + $0x100] sm:$0xff] }
  0x67   : > { %917 = vmatpush.msra.mxu1 %v2258_v14  ;;  %1007 = vmatpush.msra.mxu2 %v2270_v26 }
  0x69   : > { %918 = vmatpush.msra.mxu1 %v2257_v19 }
  0x6a   : > { %706 = vmatmul.f32.gmra.mxu0 %v2896_v12  ;;  %735 = vmatmul.f32.gmra.mxu1 %v2899_v13  ;;  %v854_v13 = vld [vmem:[%s3707_s2 + $0x30] sm:$0xff] }
  0x6b   : > { %878 = vmatpush.msra.mxu0 %v854_v13  ;;  %919 = vmatpush.msra.mxu1 %v2256_v22 }
  0x6c   : > { %800 = vmatmul.f32.gmra.mxu2 %v2954_v30  ;;  %829 = vmatmul.f32.gmra.mxu3 %v2957_v31 }
  0x6d   : > { %879 = vmatpush.msra.mxu0 %v853_v18  ;;  %920 = vmatpush.msra.mxu1 %v2255_v25 }
  0x6f   : > { %880 = vmatpush.msra.mxu0 %v852_v21 }
  0x71   : > { %881 = vmatpush.msra.mxu0 %v851_v24 }
  0x72   : > { %709 = vmatmul.f32.gmra.mxu0 %v2954_v30  ;;  %738 = vmatmul.f32.gmra.mxu1 %v2957_v31  ;;  %v2254_v30 = vld [vmem:[%s3707_s2 + $0x50] sm:$0xff] }
  0x73   : > { %v2269_v31 = vld [vmem:[%s3707_s2 + $0x90] sm:$0xff]  ;;  %882 = vmatpush.msra.mxu0 %v850_v29  ;;  %921 = vmatpush.msra.mxu1 %v2254_v30 }
  0x74   : > { %803 = vmatmul.f32.gmra.mxu2 %v3012_v48  ;;  %832 = vmatmul.f32.gmra.mxu3 %v3015_v49 }
  0x75   : > { %1008 = vmatpush.msra.mxu2 %v2269_v31  ;;  %883 = vmatpush.msra.mxu0 %v849_v34 }
  0x76   : > { %922 = vmatpush.msra.mxu1 %v2253_v35 }
  0x77   : > { %1009 = vmatpush.msra.mxu2 %v2268_v36  ;;  %884 = vmatpush.msra.mxu0 %v848_v37 }
  0x78   : > { %923 = vmatpush.msra.mxu1 %v2252_v38 }
  0x79   : > { %1010 = vmatpush.msra.mxu2 %v2267_v39 }
  0x7a   : > { %712 = vmatmul.f32.gmra.mxu0 %v3012_v48  ;;  %741 = vmatmul.f32.gmra.mxu1 %v3015_v49  ;;  %v2302_v48 = vld [vmem:[%s3707_s2 + $0x138] sm:$0xff] }
  0x7b   : > { %v2316_v49 = vld [vmem:[%s3707_s2 + $0x178] sm:$0xff]  ;;  %1131 = vmatpush.msrb.mxu1 %v2302_v48 }
  0x7c   : > { %1195 = vmatpush.msrb.mxu2 %v2316_v49  ;;  %v2340_v48 = vld [vmem:[%s3707_s2 + $0x1d8] sm:$0xff]  ;;  %v2339_v49 = vld [vmem:[%s3707_s2 + $0x1d0] sm:$0xff] }
  0x7d   : > { %1132 = vmatpush.msrb.mxu1 %v2301_v50  ;;  %v2338_v50 = vld [vmem:[%s3707_s2 + $0x1c8] sm:$0xff] }
  0x7e   : > { %1196 = vmatpush.msrb.mxu2 %v2315_v51  ;;  %v2337_v51 = vld [vmem:[%s3707_s2 + $0x1c0] sm:$0xff] }
  0x7f   : > { %1133 = vmatpush.msrb.mxu1 %v2300_v52 }
  0x80   : > { %1197 = vmatpush.msrb.mxu2 %v2314_v53 }
  0x81   : > { %1134 = vmatpush.msrb.mxu1 %v2299_v54 }
  0x82   : > { %1198 = vmatpush.msrb.mxu2 %v2313_v55 }
  0x83   : > { %1135 = vmatpush.msrb.mxu1 %v2298_v1  ;;  %v898_v1 = vld [vmem:[%s3708_s3] sm:$0xff] }
  0x84   : > { %1199 = vmatpush.msrb.mxu2 %v2312_v2  ;;  %v2264_v2 = vld [vmem:[%s3708_s3 + $0x8] sm:$0xff] }
  0x85   : > { %1136 = vmatpush.msrb.mxu1 %v2297_v3 }
  0x86   : > { %1200 = vmatpush.msrb.mxu2 %v2311_v5  ;;  %v2279_v5 = vld [vmem:[%s3708_s3 + $0x10] sm:$0xff] }
  0x87   : > { %1137 = vmatpush.msrb.mxu1 %v2296_v6  ;;  %v2287_v6 = vld [vmem:[%s3707_s2 + $0xf0] sm:$0xff] }
  0x88   : > { %1201 = vmatpush.msrb.mxu2 %v2310_v7  ;;  %v2286_v7 = vld [vmem:[%s3707_s2 + $0xe8] sm:$0xff] }
  0x89   : > { %1138 = vmatpush.msrb.mxu1 %v2295_v61  ;;  %v2283_v61 = vld [vmem:[%s3707_s2 + $0xd0] sm:$0xff] }
  0x8a   : > { %1202 = vmatpush.msrb.mxu2 %v2309_v10  ;;  %v2282_v10 = vld [vmem:[%s3707_s2 + $0xc8] sm:$0xff] }
  0xb7   : > { %v3112_v11 = vpop.f32.mrf.mxu0 }
  0xb8   : > { %v3114_v12 = vpop.f32.mrf.mxu1  ;;  %v3125_v16 = vpop.f32.mrf.mxu2 }
  0xb9   : > { %v3127_v17 = vpop.f32.mrf.mxu3  ;;  %v552_v56 = vadd.f32 %v3114_v12, %v3112_v11 }
  0xba   : > { %v643_v57 = vadd.f32 %v3127_v17, %v3125_v16 }
  0xbc   : > { %v836_v8 = vmax.f32 %v552_v56, %v643_v57 }
  0xc1   : > { %v3156_v27 = vpop.f32.mrf.mxu2  ;;  %v3158_v28 = vpop.f32.mrf.mxu3 }
  0xc2   : > { %v3169_v32 = vpop.f32.mrf.mxu0  ;;  %v3171_v33 = vpop.f32.mrf.mxu1  ;;  %v646_v12 = vadd.f32 %v3158_v28, %v3156_v27 }
  0xc3   : > { %v555_v11 = vadd.f32 %v3171_v33, %v3169_v32 }
  0xc5   : > { %v837_v19 = vmax.f32 %v555_v11, %v646_v12  ;;  %v2281_v11 = vld [vmem:[%s3707_s2 + $0xc0] sm:$0xff]  ;;  %v2330_v12 = vld [vmem:[%s3707_s2 + $0x1b8] sm:$0xff] }
  0xcb   : > { %v3191_v40 = vpop.f32.mrf.mxu2  ;;  %v3193_v41 = vpop.f32.mrf.mxu3 }
  0xcc   : > { %v3195_v42 = vpop.f32.mrf.mxu0  ;;  %v3197_v43 = vpop.f32.mrf.mxu1  ;;  %v649_v23 = vadd.f32 %v3193_v41, %v3191_v40  ;;  %v2344_v40 = vld [vmem:[%s3707_s2 + $0x1f8] sm:$0xff]  ;;  %v2343_v41 = vld [vmem:[%s3707_s2 + $0x1f0] sm:$0xff] }
  0xcd   : > { %v558_v22 = vadd.f32 %v3197_v43, %v3195_v42  ;;  %v2342_v43 = vld [vmem:[%s3707_s2 + $0x1e8] sm:$0xff] }
  0xcf   : > { %v838_v30 = vmax.f32 %v558_v22, %v649_v23 }
  0xd5   : > { %v3199_v44 = vpop.f32.mrf.mxu2  ;;  %v3201_v45 = vpop.f32.mrf.mxu3 }
  0xd6   : > { %v3203_v46 = vpop.f32.mrf.mxu0  ;;  %v3205_v47 = vpop.f32.mrf.mxu1  ;;  %v652_v34 = vadd.f32 %v3201_v45, %v3199_v44 }
  0xd7   : > { %v561_v33 = vadd.f32 %v3205_v47, %v3203_v46  ;;  %v2341_v47 = vld [vmem:[%s3707_s2 + $0x1e0] sm:$0xff] }
  0xd9   : > { %v839_v44 = vmax.f32 %v561_v33, %v652_v34 }
  0xdf   : > { %v704_v58 = vpop.f32.mrf.mxu0  ;;  %v733_v59 = vpop.f32.mrf.mxu1 }
  0xe0   : > { %v734_v62 = vadd.f32 %v733_v59, %v704_v58  ;;  %v795_v63 = vpop.f32.mrf.mxu2  ;;  %v824_v0 = vpop.f32.mrf.mxu3 }
  0xe1   : > { %v825_v4 = vadd.f32 %v824_v0, %v795_v63 }
  0xe3   : > { %v840_v9 = vmax.f32 %v734_v62, %v825_v4  ;;  %v2288_v4 = vld [vmem:[%s3707_s2 + $0xf8] sm:$0xff] }
  0xe5   : > { %v3253_v60 = vmax.f32 %v836_v8, %v840_v9  ;;  %v2285_v8 = vld [vmem:[%s3707_s2 + $0xe0] sm:$0xff]  ;;  %v2284_v9 = vld [vmem:[%s3707_s2 + $0xd8] sm:$0xff] }
  0xe7   : > { %2248 = vmatmul.msk.f32.vlgmr.msra.gmra.mxu0 %vm856_vm0, %v3253_v60  ;;  %2260 = vmatmul.msk.f32.vlgmr.msra.gmra.mxu1 %vm856_vm0, %v3253_v60  ;;  %v707_v13 = vpop.f32.mrf.mxu0  ;;  %v736_v14 = vpop.f32.mrf.mxu1 }
  0xe8   : > { %2275 = vmatmul.msk.f32.vlgmr.msra.gmra.mxu2 %vm856_vm0, %v3253_v60  ;;  %v737_v15 = vadd.f32 %v736_v14, %v707_v13  ;;  %v798_v16 = vpop.f32.mrf.mxu2  ;;  %v827_v17 = vpop.f32.mrf.mxu3  ;;  %1323 = vmatpush.msra.mxu1 %v2344_v40  ;;  %v2329_v13 = vld [vmem:[%s3707_s2 + $0x1b0] sm:$0xff]  ;;  %v2328_v14 = vld [vmem:[%s3707_s2 + $0x1a8] sm:$0xff] }
  0xe9   : > { %v828_v18 = vadd.f32 %v827_v17, %v798_v16  ;;  %v2326_v16 = vld [vmem:[%s3707_s2 + $0x198] sm:$0xff]  ;;  %v2325_v17 = vld [vmem:[%s3707_s2 + $0x190] sm:$0xff] }
  0xea   : > { %1324 = vmatpush.msra.mxu1 %v2343_v41  ;;  %v2307_v41 = vld [vmem:[%s3708_s3 + $0x20] sm:$0xff] }
  0xeb   : > { %v841_v20 = vmax.f32 %v737_v15, %v828_v18  ;;  %v2327_v15 = vld [vmem:[%s3707_s2 + $0x1a0] sm:$0xff]  ;;  %v2324_v18 = vld [vmem:[%s3707_s2 + $0x188] sm:$0xff] }
  0xec   : > { %1325 = vmatpush.msra.mxu1 %v2342_v43 }
  0xed   : > { %v3271_v21 = vmax.f32 %v837_v19, %v841_v20  ;;  %v2323_v19 = vld [vmem:[%s3707_s2 + $0x180] sm:$0xff] }
  0xee   : > { %1326 = vmatpush.msra.mxu1 %v2341_v47 }
  0xef   : > { %2249 = vmatmul.msk.f32.gmra.mxu0 %vm856_vm0, %v3271_v21  ;;  %2261 = vmatmul.msk.f32.gmra.mxu1 %vm856_vm0, %v3271_v21  ;;  %v710_v24 = vpop.f32.mrf.mxu0  ;;  %v739_v25 = vpop.f32.mrf.mxu1 }
  0xf0   : > { %2276 = vmatmul.msk.f32.gmra.mxu2 %vm856_vm0, %v3271_v21  ;;  %v740_v26 = vadd.f32 %v739_v25, %v710_v24  ;;  %v801_v27 = vpop.f32.mrf.mxu2  ;;  %v830_v28 = vpop.f32.mrf.mxu3  ;;  %1327 = vmatpush.msra.mxu1 %v2340_v48 }
  0xf1   : > { %v831_v29 = vadd.f32 %v830_v28, %v801_v27 }
  0xf2   : > { %1328 = vmatpush.msra.mxu1 %v2339_v49 }
  0xf3   : > { %v842_v31 = vmax.f32 %v740_v26, %v831_v29 }
  0xf4   : > { %1329 = vmatpush.msra.mxu1 %v2338_v50  ;;  %v2335_v50 = vld [vmem:[%s3708_s3 + $0x30] sm:$0xff] }
  0xf5   : > { %v3283_v32 = vmax.f32 %v838_v30, %v842_v31 }
  0xf6   : > { %1330 = vmatpush.msra.mxu1 %v2337_v51 }
  0xf7   : > { %2250 = vmatmul.msk.f32.gmra.mxu0 %vm856_vm0, %v3283_v32  ;;  %2262 = vmatmul.msk.f32.gmra.mxu1 %vm856_vm0, %v3283_v32  ;;  %v713_v35 = vpop.f32.mrf.mxu0  ;;  %v742_v36 = vpop.f32.mrf.mxu1 }
  0xf8   : > { %2277 = vmatmul.msk.f32.gmra.mxu2 %vm856_vm0, %v3283_v32  ;;  %v743_v37 = vadd.f32 %v742_v36, %v713_v35  ;;  %v804_v38 = vpop.f32.mrf.mxu2  ;;  %v833_v39 = vpop.f32.mrf.mxu3 }
  0xf9   : > { %v834_v42 = vadd.f32 %v833_v39, %v804_v38  ;;  %v2293_v38 = vld [vmem:[%s3708_s3 + $0x18] sm:$0xff] }
  0xfb   : > { %v843_v45 = vmax.f32 %v743_v37, %v834_v42 }
  0xfd   : > { %v3304_v46 = vmax.f32 %v839_v44, %v843_v45  ;;  %v2321_v45 = vld [vmem:[%s3708_s3 + $0x28] sm:$0xff] }
  0xff   : > { %2251 = vmatmul.msk.f32.gmra.mxu0 %vm856_vm0, %v3304_v46  ;;  %2263 = vmatmul.msk.f32.gmra.mxu1 %vm856_vm0, %v3304_v46 }
 0x100   : > { %2278 = vmatmul.msk.f32.gmra.mxu2 %vm856_vm0, %v3304_v46 }
 0x107   : > { %2303 = vmatmul.msk.f32.vlgmr.msrb.gmra.mxu1 %vm856_vm0, %v3253_v60 }
 0x108   : > { %2317 = vmatmul.msk.f32.vlgmr.msrb.gmra.mxu2 %vm856_vm0, %v3253_v60 }
 0x10f   : > { %2304 = vmatmul.msk.f32.gmra.mxu1 %vm856_vm0, %v3271_v21 }
 0x110   : > { %2318 = vmatmul.msk.f32.gmra.mxu2 %vm856_vm0, %v3271_v21 }
 0x117   : > { %2305 = vmatmul.msk.f32.gmra.mxu1 %vm856_vm0, %v3283_v32 }
 0x118   : > { %2319 = vmatmul.msk.f32.gmra.mxu2 %vm856_vm0, %v3283_v32 }
 0x11f   : > { %2306 = vmatmul.msk.f32.gmra.mxu1 %vm856_vm0, %v3304_v46 }
 0x120   : > { %2320 = vmatmul.msk.f32.gmra.mxu2 %vm856_vm0, %v3304_v46 }
 0x127   : > { %2345 = vmatmul.msk.f32.vlgmr.msra.gmra.mxu1 %vm856_vm0, %v3253_v60 }
 0x12f   : > { %2346 = vmatmul.msk.f32.gmra.mxu1 %vm856_vm0, %v3271_v21 }
 0x137   : > { %2347 = vmatmul.msk.f32.gmra.mxu1 %vm856_vm0, %v3283_v32 }
 0x13f   : > { %2348 = vmatmul.msk.f32.gmra.mxu1 %vm856_vm0, %v3304_v46 }
 0x164   : > { %v886_v52 = vpop.f32.mrf.mxu0  ;;  %v925_v53 = vpop.f32.mrf.mxu1 }
 0x16b   : > { %v1012_v54 = vpop.f32.mrf.mxu2 }
 0x16c   : > { %v889_v55 = vpop.f32.mrf.mxu0  ;;  %v928_v56 = vpop.f32.mrf.mxu1 }
 0x173   : > { %v1015_v57 = vpop.f32.mrf.mxu2 }
 0x174   : > { %v892_v58 = vpop.f32.mrf.mxu0  ;;  %v931_v59 = vpop.f32.mrf.mxu1 }
 0x17b   : > { %v1018_v62 = vpop.f32.mrf.mxu2 }
 0x17c   : > { %v895_v63 = vpop.f32.mrf.mxu0  ;;  %v934_v0 = vpop.f32.mrf.mxu1 }
 0x17d   : > { %955 = vmatpush.msrb.mxu0 %v934_v0  ;;  %978 = vmatpush.msra.mxu3 %v895_v63 }
 0x17f   : > { %956 = vmatpush.msrb.mxu0 %v931_v59  ;;  %979 = vmatpush.msra.mxu3 %v892_v58  ;;  %v2353_v58 = vld [vmem:[%s3707_s2 + $0x210] sm:$0xff]  ;;  %v2352_v59 = vld [vmem:[%s3707_s2 + $0x208] sm:$0xff] }
 0x181   : > { %957 = vmatpush.msrb.mxu0 %v928_v56  ;;  %980 = vmatpush.msra.mxu3 %v889_v55  ;;  %v2356_v55 = vld [vmem:[%s3707_s2 + $0x228] sm:$0xff]  ;;  %v2355_v56 = vld [vmem:[%s3707_s2 + $0x220] sm:$0xff] }
 0x183   : > { %v1021_v3 = vpop.f32.mrf.mxu2  ;;  %958 = vmatpush.msrb.mxu0 %v925_v53  ;;  %981 = vmatpush.msra.mxu3 %v886_v52  ;;  %v2358_v52 = vld [vmem:[%s3707_s2 + $0x238] sm:$0xff] }
 0x184   : > { %2266 = vmatmul.msk.f32.vlgmr.msra.gmra.mxu3 %vm939_vm1, %v898_v1  ;;  %2265 = vmatmul.msk.f32.vlgmr.msrb.gmra.mxu0 %vm939_vm1, %v2264_v2  ;;  %v1140_v26 = vpop.f32.mrf.mxu1  ;;  %v2349_v53 = vld [vmem:[%s3708_s3 + $0x38] sm:$0xff] }
 0x185   : > { %1041 = vmatpush.msrb.mxu3 %v1021_v3 }
 0x187   : > { %1042 = vmatpush.msrb.mxu3 %v1018_v62  ;;  %v2351_v62 = vld [vmem:[%s3707_s2 + $0x200] sm:$0xff] }
 0x189   : > { %1043 = vmatpush.msrb.mxu3 %v1015_v57  ;;  %v2354_v57 = vld [vmem:[%s3707_s2 + $0x218] sm:$0xff] }
 0x18b   : > { %1044 = vmatpush.msrb.mxu3 %v1012_v54  ;;  %v1204_v30 = vpop.f32.mrf.mxu2  ;;  %v2357_v54 = vld [vmem:[%s3707_s2 + $0x230] sm:$0xff] }
 0x18c   : > { %2280 = vmatmul.msk.f32.vlgmr.msrb.gmra.mxu3 %vm939_vm1, %v2279_v5  ;;  %v1143_v28 = vpop.f32.mrf.mxu1 }
 0x18d   : > { %1067 = vmatpush.msra.mxu3 %v2288_v4 }
 0x18f   : > { %1068 = vmatpush.msra.mxu3 %v2287_v6 }
 0x191   : > { %1069 = vmatpush.msra.mxu3 %v2286_v7 }
 0x193   : > { %1070 = vmatpush.msra.mxu3 %v2285_v8  ;;  %v1207_v34 = vpop.f32.mrf.mxu2 }
 0x194   : > { %v1146_v31 = vpop.f32.mrf.mxu1 }
 0x195   : > { %1071 = vmatpush.msra.mxu3 %v2284_v9 }
 0x197   : > { %1072 = vmatpush.msra.mxu3 %v2283_v61 }
 0x199   : > { %1073 = vmatpush.msra.mxu3 %v2282_v10 }
 0x19b   : > { %1074 = vmatpush.msra.mxu3 %v2281_v11  ;;  %v1210_v37 = vpop.f32.mrf.mxu2  ;;  %v2363_v11 = vld [vmem:[%s3708_s3 + $0x40] sm:$0xff] }
 0x19c   : > { %2289 = vmatmul.msk.f32.vlgmr.msra.gmra.mxu3 %vm856_vm0, %v3253_v60  ;;  %v1149_v35 = vpop.f32.mrf.mxu1 }
 0x19d   : > { %1259 = vmatpush.msrb.mxu3 %v2330_v12  ;;  %v1443_v12 = vld [vmem:[%s3710_s5 + $0x8] sm:$0xff] }
 0x19f   : > { %1260 = vmatpush.msrb.mxu3 %v2329_v13  ;;  %v2367_v13 = vld [vmem:[%s3710_s5 + $0x18] sm:$0xff] }
 0x1a1   : > { %1261 = vmatpush.msrb.mxu3 %v2328_v14  ;;  %v2383_v14 = vld [vmem:[%s3710_s5 + $0x48] sm:$0xff] }
 0x1a3   : > { %1262 = vmatpush.msrb.mxu3 %v2327_v15  ;;  %v1213_v42 = vpop.f32.mrf.mxu2  ;;  %v1442_v15 = vld [vmem:[%s3710_s5] sm:$0xff] }
 0x1a4   : > { %2290 = vmatmul.msk.f32.gmra.mxu3 %vm856_vm0, %v3271_v21  ;;  %v1332_v40 = vpop.f32.mrf.mxu1 }
 0x1a5   : > { %1263 = vmatpush.msrb.mxu3 %v2326_v16  ;;  %v2366_v16 = vld [vmem:[%s3710_s5 + $0x10] sm:$0xff] }
 0x1a7   : > { %1264 = vmatpush.msrb.mxu3 %v2325_v17  ;;  %v2382_v17 = vld [vmem:[%s3710_s5 + $0x40] sm:$0xff] }
 0x1a9   : > { %1265 = vmatpush.msrb.mxu3 %v2324_v18  ;;  %v2373_v18 = vld [vmem:[%s3710_s5 + $0x28] sm:$0xff] }
 0x1ab   : > { %1266 = vmatpush.msrb.mxu3 %v2323_v19  ;;  %v2393_v19 = vld [vmem:[%s3710_s5 + $0x68] sm:$0xff] }
 0x1ac   : > { %2291 = vmatmul.msk.f32.gmra.mxu3 %vm856_vm0, %v3283_v32  ;;  %v1335_v44 = vpop.f32.mrf.mxu1 }
 0x1ad   : > { %1486 = vmatpush.msra.mxu3 %v2367_v13 }
 0x1af   : > { %1487 = vmatpush.msra.mxu3 %v2366_v16 }
 0x1b4   : > { %2292 = vmatmul.msk.f32.gmra.mxu3 %vm856_vm0, %v3304_v46  ;;  %v1338_v48 = vpop.f32.mrf.mxu1 }
 0x1bc   : > { %2331 = vmatmul.msk.f32.vlgmr.msrb.gmra.mxu3 %vm856_vm0, %v3253_v60  ;;  %v1341_v51 = vpop.f32.mrf.mxu1 }
 0x1bd   : > { %1558 = vmatpush.msrb.mxu3 %v2373_v18 }
 0x1c4   : > { %2332 = vmatmul.msk.f32.gmra.mxu3 %vm856_vm0, %v3271_v21 }
 0x1cc   : > { %2333 = vmatmul.msk.f32.gmra.mxu3 %vm856_vm0, %v3283_v32 }
 0x1d4   : > { %2334 = vmatmul.msk.f32.gmra.mxu3 %vm856_vm0, %v3304_v46 }
 0x201   : > { %v960_v22 = vpop.f32.mrf.mxu0 }
 0x207   : > { %v983_v20 = vpop.f32.mrf.mxu3 }
 0x208   : > { %v984_v23 = vadd.f32 %v983_v20, %v960_v22  ;;  %v2372_v20 = vld [vmem:[%s3710_s5 + $0x20] sm:$0xff] }
 0x209   : > { %v2392_v22 = vld [vmem:[%s3710_s5 + $0x60] sm:$0xff]  ;;  %1559 = vmatpush.msrb.mxu3 %v2372_v20 }
 0x20f   : > { %v1046_v24 = vpop.f32.mrf.mxu3 }
 0x210   : > { %v3427_v25 = vadd.f32 %v1046_v24, %v984_v23 }
 0x21f   : > { %v1076_v27 = vpop.f32.mrf.mxu3 }
 0x227   : > { %v1079_v29 = vpop.f32.mrf.mxu3 }
 0x22f   : > { %v1082_v33 = vpop.f32.mrf.mxu3 }
 0x237   : > { %v1085_v36 = vpop.f32.mrf.mxu3 }
 0x238   : > { %1105 = vmatpush.msra.mxu0 %v1085_v36  ;;  %v2378_v36 = vld [vmem:[%s3710_s5 + $0x38] sm:$0xff] }
 0x23a   : > { %1106 = vmatpush.msra.mxu0 %v1082_v33  ;;  %v1468_v33 = vld [vmem:[%s3711_s6] sm:$0xf] }
 0x23c   : > { %1107 = vmatpush.msra.mxu0 %v1079_v29  ;;  %v2402_v29 = vld [vmem:[%s3710_s5 + $0x80] sm:$0xff] }
 0x23e   : > { %1108 = vmatpush.msra.mxu0 %v1076_v27 }
 0x23f   : > { %2294 = vmatmul.msk.f32.vlgmr.msra.gmra.mxu0 %vm939_vm1, %v2293_v38  ;;  %v1268_v39 = vpop.f32.mrf.mxu3  ;;  %v2388_v38 = vld [vmem:[%s3710_s5 + $0x58] sm:$0xff] }
 0x240   : > { %1169 = vmatpush.msrb.mxu0 %v1149_v35 }
 0x242   : > { %1170 = vmatpush.msrb.mxu0 %v1146_v31  ;;  %v2369_v31 = vld [vmem:[%s3711_s6 + $0x4] sm:$0xf] }
 0x244   : > { %1171 = vmatpush.msrb.mxu0 %v1143_v28  ;;  %v2403_v28 = vld [vmem:[%s3710_s5 + $0x88] sm:$0xff] }
 0x246   : > { %1172 = vmatpush.msrb.mxu0 %v1140_v26 }
 0x247   : > { %v1271_v43 = vpop.f32.mrf.mxu3  ;;  %2308 = vmatmul.msk.f32.vlgmr.msrb.gmra.mxu0 %vm939_vm1, %v2307_v41 }
 0x248   : > { %1233 = vmatpush.msra.mxu0 %v1213_v42 }
 0x24a   : > { %1234 = vmatpush.msra.mxu0 %v1210_v37  ;;  %v2377_v37 = vld [vmem:[%s3710_s5 + $0x30] sm:$0xff] }
 0x24c   : > { %1235 = vmatpush.msra.mxu0 %v1207_v34 }
 0x24e   : > { %1236 = vmatpush.msra.mxu0 %v1204_v30 }
 0x24f   : > { %v1274_v47 = vpop.f32.mrf.mxu3  ;;  %2322 = vmatmul.msk.f32.vlgmr.msra.gmra.mxu0 %vm939_vm1, %v2321_v45  ;;  %v2385_v45 = vld [vmem:[%s3711_s6 + $0x10] sm:$0xf] }
 0x257   : > { %v1277_v49 = vpop.f32.mrf.mxu3 }
 0x258   : > { %1297 = vmatpush.msrb.mxu0 %v1277_v49  ;;  %v2405_v49 = vld [vmem:[%s3711_s6 + $0x20] sm:$0xf] }
 0x25a   : > { %1298 = vmatpush.msrb.mxu0 %v1274_v47 }
 0x25c   : > { %1299 = vmatpush.msrb.mxu0 %v1271_v43  ;;  %v2398_v43 = vld [vmem:[%s3710_s5 + $0x78] sm:$0xff] }
 0x25e   : > { %1300 = vmatpush.msrb.mxu0 %v1268_v39  ;;  %v2387_v39 = vld [vmem:[%s3710_s5 + $0x50] sm:$0xff] }
 0x25f   : > { %2336 = vmatmul.msk.f32.vlgmr.msrb.gmra.mxu0 %vm939_vm1, %v2335_v50 }
 0x260   : > { %1361 = vmatpush.msra.mxu0 %v1341_v51  ;;  %v2380_v51 = vld [vmem:[%s3711_s6 + $0xc] sm:$0xf] }
 0x262   : > { %1362 = vmatpush.msra.mxu0 %v1338_v48  ;;  %v2395_v48 = vld [vmem:[%s3711_s6 + $0x18] sm:$0xf] }
 0x264   : > { %1363 = vmatpush.msra.mxu0 %v1335_v44  ;;  %v2397_v44 = vld [vmem:[%s3710_s5 + $0x70] sm:$0xff] }
 0x266   : > { %1364 = vmatpush.msra.mxu0 %v1332_v40  ;;  %v2375_v40 = vld [vmem:[%s3711_s6 + $0x8] sm:$0xf] }
 0x267   : > { %2350 = vmatmul.msk.f32.vlgmr.msra.gmra.mxu0 %vm939_vm1, %v2349_v53  ;;  %v2390_v53 = vld [vmem:[%s3711_s6 + $0x14] sm:$0xf] }
 0x268   : > { %1387 = vmatpush.msrb.mxu0 %v2358_v52 }
 0x26a   : > { %1388 = vmatpush.msrb.mxu0 %v2357_v54 }
 0x26c   : > { %1389 = vmatpush.msrb.mxu0 %v2356_v55  ;;  %v2400_v55 = vld [vmem:[%s3711_s6 + $0x1c] sm:$0xf] }
 0x26e   : > { %1390 = vmatpush.msrb.mxu0 %v2355_v56 }
 0x270   : > { %1391 = vmatpush.msrb.mxu0 %v2354_v57 }
 0x272   : > { %1392 = vmatpush.msrb.mxu0 %v2353_v58 }
 0x274   : > { %1393 = vmatpush.msrb.mxu0 %v2352_v59  ;;  %v1892_v59 = vld [vmem:[%s3713_s8] sm:$0xf] }
 0x276   : > { %1394 = vmatpush.msrb.mxu0 %v2351_v62  ;;  %v2407_v62 = vld [vmem:[%s3713_s8 + $0x4] sm:$0xf] }
 0x277   : > { %2359 = vmatmul.msk.f32.vlgmr.msrb.gmra.mxu0 %vm856_vm0, %v3253_v60 }
 0x278   : > { %1656 = vmatpush.msra.mxu0 %v2383_v14 }
 0x27a   : > { %1657 = vmatpush.msra.mxu0 %v2382_v17 }
 0x27c   : > { %1754 = vmatpush.msrb.mxu0 %v2393_v19 }
 0x27e   : > { %1755 = vmatpush.msrb.mxu0 %v2392_v22 }
 0x27f   : > { %2360 = vmatmul.msk.f32.gmra.mxu0 %vm856_vm0, %v3271_v21  ;;  %v1434_v21 = vld [vmem:[%s3709_s4] sm:$0xff] }
 0x287   : > { %2361 = vmatmul.msk.f32.gmra.mxu0 %vm856_vm0, %v3283_v32  ;;  %v2527_v32 = vmov 0  }
 0x288   : > { %2462 = vset.pattern.permute.xlu0 %v2527_v32 }
 0x289   : > { %1437 = vperm.xlu0 %2462, %v1434_v21   ;;  %v2020_v21 = vld [vmem:[%s3715_s10 + $0x50] sm:$0xff] }
 0x28f   : > { %2362 = vmatmul.msk.f32.gmra.mxu0 %vm856_vm0, %v3304_v46  ;;  %v1884_v46 = vld [vmem:[%s3712_s7] sm:$0xf] }
 0x291   : > { %1887 = vperm.xlu0 %2462, %v1884_v46  }
 0x2bc   : > { %v1110_v63 = vpop.f32.mrf.mxu0 }
 0x2bd   : > { %v1113_v0 = vadd.f32 %v1110_v63, %v3427_v25  ;;  %v2412_v63 = vld [vmem:[%s3713_s8 + $0x8] sm:$0xf] }
 0x2c4   : > { %v1174_v1 = vpop.f32.mrf.mxu0 }
 0x2c5   : > { %v1177_v2 = vadd.f32 %v1174_v1, %v1113_v0  ;;  %v2415_v0 = vld [vmem:[%s3713_s8 + $0xc] sm:$0xf] }
 0x2cc   : > { %v1238_v3 = vpop.f32.mrf.mxu0 }
 0x2cd   : > { %v1241_v4 = vadd.f32 %v1238_v3, %v1177_v2  ;;  %v2025_v2 = vld [vmem:[%s3715_s10 + $0x78] sm:$0xff]  ;;  %v2024_v3 = vld [vmem:[%s3715_s10 + $0x70] sm:$0xff] }
 0x2dc   : > { %v1302_v5 = vpop.f32.mrf.mxu0 }
 0x2dd   : > { %v1305_v6 = vadd.f32 %v1302_v5, %v1241_v4  ;;  %v2023_v4 = vld [vmem:[%s3715_s10 + $0x68] sm:$0xff] }
 0x2e4   : > { %v1366_v7 = vpop.f32.mrf.mxu0 }
 0x2e5   : > { %v1369_v60 = vadd.f32 %v1366_v7, %v1305_v6  ;;  %v2022_v7 = vld [vmem:[%s3715_s10 + $0x60] sm:$0xff] }
 0x2f4   : > { %v1396_v8 = vpop.f32.mrf.mxu0 }
 0x2fb   : > { %v1438_v25 = vpop.permute.xlu0 %1437 }
 0x2fc   : > { %v1399_v9 = vpop.f32.mrf.mxu0 }
 0x303   : > { %v1888_v17 = vpop.permute.xlu0 %1887 }
 0x304   : > { %v1402_v61 = vpop.f32.mrf.mxu0 }
 0x30c   : > { %v1405_v10 = vpop.f32.mrf.mxu0 }
 0x30d   : > { %1425 = vmatpush.msra.mxu2 %v1405_v10 }
 0x30f   : > { %1426 = vmatpush.msra.mxu2 %v1402_v61 }
 0x311   : > { %1427 = vmatpush.msra.mxu2 %v1399_v9  ;;  %v2019_v9 = vld [vmem:[%s3715_s10 + $0x48] sm:$0xff] }
 0x313   : > { %1428 = vmatpush.msra.mxu2 %v1396_v8 }
 0x314   : > { %2364 = vmatmul.msk.f32.vlgmr.msra.gmra.mxu2 %vm939_vm1, %v2363_v11 }
 0x315   : > { %1462 = vmatpush.msrb.mxu2 %v1443_v12 }
 0x317   : > { %1463 = vmatpush.msrb.mxu2 %v1442_v15 }
 0x397   : > { %v1430_v23 = vpop.f32.mrf.mxu2 }
 0x398   : > { %v1433_v24 = vadd.f32 %v1430_v23, %v1369_v60  ;;  %v2021_v60 = vld [vmem:[%s3715_s10 + $0x58] sm:$0xff] }
 0x39a   : > { %v1440_v26 = vadd.f32 %v1438_v25, %v1433_v24  ;;  %v2018_v24 = vld [vmem:[%s3715_s10 + $0x40] sm:$0xff]  ;;  %v2017_v25 = vld [vmem:[%s3715_s10 + $0x38] sm:$0xff] }
 0x39c   : > { %v1441_v27 = vmax.f32 %v1440_v26, 0.0  ;;  %v2016_v26 = vld [vmem:[%s3715_s10 + $0x30] sm:$0xff] }
 0x39e   : > { %2365 = vmatmul.msk.f32.vlgmr.msrb.gmra.mxu2 %vm1444_vm2, %v1441_v27  ;;  %2368 = vmatmul.msk.f32.vlgmr.msra.gmra.mxu3 %vm1444_vm2, %v1441_v27 }
 0x39f   : > { %2384 = vmatmul.msk.f32.vlgmr.msra.gmra.mxu0 %vm1444_vm2, %v1441_v27 }
 0x3a0   : > { %1852 = vmatpush.msra.mxu0 %v2403_v28  ;;  %v2014_v28 = vld [vmem:[%s3715_s10 + $0x20] sm:$0xff] }
 0x3a2   : > { %1853 = vmatpush.msra.mxu0 %v2402_v29  ;;  %v2013_v29 = vld [vmem:[%s3715_s10 + $0x18] sm:$0xff] }
 0x3a6   : > { %2374 = vmatmul.msk.f32.vlgmr.msrb.gmra.mxu3 %vm1444_vm2, %v1441_v27 }
 0x3a7   : > { %2394 = vmatmul.msk.f32.vlgmr.msrb.gmra.mxu0 %vm1444_vm2, %v1441_v27 }
 0x3a8   : > { %2413 = vmatpush.msk.msrb.mxu0 %vm1900_vm4, %v2412_v63 }
 0x3af   : > { %2404 = vmatmul.msk.f32.vlgmr.msra.gmra.mxu0 %vm1444_vm2, %v1441_v27 }
 0x41c   : > { %v1659_v30 = vpop.f32.mrf.mxu0 }
 0x421   : > { %v1465_v34 = vpop.f32.mrf.mxu2  ;;  %v1489_v35 = vpop.f32.mrf.mxu3 }
 0x422   : > { %1513 = vmatpush.msrb.mxu1 %v1489_v35  ;;  %1536 = vmatpush.msra.mxu2 %v1465_v34  ;;  %v2051_v34 = vld [vmem:[%s3717_s12 + $0x18] sm:$0xff] }
 0x423   : > { %2370 = vmatmul.msk.f32.vlgmr.msrb.gmra.mxu1 %vm1494_vm3, %v2369_v31  ;;  %2371 = vmatmul.msk.f32.vlgmr.msra.gmra.mxu2 %vm1494_vm3, %v1468_v33  ;;  %v2011_v31 = vld [vmem:[%s3715_s10 + $0x8] sm:$0xff]  ;;  %v2010_v33 = vld [vmem:[%s3715_s10] sm:$0xff] }
 0x424   : > { %1607 = vmatpush.msrb.mxu2 %v2378_v36  ;;  %v1757_v41 = vpop.f32.mrf.mxu0 }
 0x426   : > { %1608 = vmatpush.msrb.mxu2 %v2377_v37 }
 0x428   : > { %1705 = vmatpush.msra.mxu2 %v2388_v38 }
 0x429   : > { %v1561_v42 = vpop.f32.mrf.mxu3 }
 0x42a   : > { %1706 = vmatpush.msra.mxu2 %v2387_v39  ;;  %1584 = vmatpush.msra.mxu1 %v1561_v42 }
 0x42b   : > { %2376 = vmatmul.msk.f32.vlgmr.msra.gmra.mxu1 %vm1494_vm3, %v2375_v40  ;;  %2379 = vmatmul.msk.f32.vlgmr.msrb.gmra.mxu2 %vm1444_vm2, %v1441_v27 }
 0x42c   : > { %1682 = vmatpush.msrb.mxu1 %v1659_v30  ;;  %1803 = vmatpush.msrb.mxu2 %v2398_v43  ;;  %v1855_v47 = vpop.f32.mrf.mxu0  ;;  %v2012_v30 = vld [vmem:[%s3715_s10 + $0x10] sm:$0xff] }
 0x42e   : > { %1780 = vmatpush.msra.mxu1 %v1757_v41  ;;  %1804 = vmatpush.msrb.mxu2 %v2397_v44  ;;  %v2007_v41 = vld [vmem:[%s3714_s9] sm:$0x1] }
 0x433   : > { %2386 = vmatmul.msk.f32.vlgmr.msrb.gmra.mxu1 %vm1494_vm3, %v2385_v45  ;;  %2389 = vmatmul.msk.f32.vlgmr.msra.gmra.mxu2 %vm1444_vm2, %v1441_v27  ;;  %v2050_v45 = vld [vmem:[%s3717_s12 + $0x10] sm:$0xff] }
 0x434   : > { %1878 = vmatpush.msrb.mxu1 %v1855_v47  ;;  %2408 = vmatpush.msk.msra.mxu2 %vm1900_vm4, %v2407_v62  ;;  %v2049_v47 = vld [vmem:[%s3717_s12 + $0x8] sm:$0xff] }
 0x43b   : > { %2399 = vmatmul.msk.f32.vlgmr.msrb.gmra.mxu2 %vm1444_vm2, %v1441_v27  ;;  %2396 = vmatmul.msk.f32.vlgmr.msra.gmra.mxu1 %vm1494_vm3, %v2395_v48  ;;  %v2015_v27 = vld [vmem:[%s3715_s10 + $0x28] sm:$0xff]  ;;  %v2048_v48 = vld [vmem:[%s3717_s12] sm:$0xff] }
 0x43c   : > { %2416 = vmatpush.msk.msra.mxu1 %vm1900_vm4, %v2415_v0  ;;  %2027 = vmatpush.msrb.mxu2 %v2025_v2 }
 0x43e   : > { %2028 = vmatpush.msrb.mxu2 %v2024_v3 }
 0x440   : > { %2029 = vmatpush.msrb.mxu2 %v2023_v4 }
 0x442   : > { %2030 = vmatpush.msrb.mxu2 %v2022_v7 }
 0x443   : > { %2406 = vmatmul.msk.f32.vlgmr.msrb.gmra.mxu1 %vm1494_vm3, %v2405_v49  ;;  %v2026_v49 = vld [vmem:[%s3716_s11] sm:$0x1] }
 0x444   : > { %2031 = vmatpush.msrb.mxu2 %v2021_v60 }
 0x446   : > { %2032 = vmatpush.msrb.mxu2 %v2020_v21 }
 0x448   : > { %2033 = vmatpush.msrb.mxu2 %v2019_v9 }
 0x44a   : > { %2034 = vmatpush.msrb.mxu2 %v2018_v24 }
 0x44c   : > { %2035 = vmatpush.msrb.mxu2 %v2017_v25 }
 0x44e   : > { %2036 = vmatpush.msrb.mxu2 %v2016_v26 }
 0x450   : > { %2037 = vmatpush.msrb.mxu2 %v2015_v27 }
 0x452   : > { %2038 = vmatpush.msrb.mxu2 %v2014_v28 }
 0x454   : > { %2039 = vmatpush.msrb.mxu2 %v2013_v29 }
 0x456   : > { %2040 = vmatpush.msrb.mxu2 %v2012_v30 }
 0x458   : > { %2041 = vmatpush.msrb.mxu2 %v2011_v31 }
 0x45a   : > { %2042 = vmatpush.msrb.mxu2 %v2010_v33 }
 0x4a0   : > { %v1515_v57 = vpop.f32.mrf.mxu1 }
 0x4a6   : > { %v1538_v50 = vpop.f32.mrf.mxu2 }
 0x4a7   : > { %v1539_v5 = vadd.f32 %v1538_v50, %v1515_v57 }
 0x4a8   : > { %v1586_v58 = vpop.f32.mrf.mxu1 }
 0x4a9   : > { %v1589_v8 = vadd.f32 %v1586_v58, %v1539_v5 }
 0x4ae   : > { %v1610_v52 = vpop.f32.mrf.mxu2 }
 0x4af   : > { %1633 = vmatpush.msra.mxu3 %v1610_v52 }
 0x4b0   : > { %2381 = vmatmul.msk.f32.vlgmr.msra.gmra.mxu3 %vm1494_vm3, %v2380_v51  ;;  %v1684_v1 = vpop.f32.mrf.mxu1 }
 0x4b6   : > { %v1708_v54 = vpop.f32.mrf.mxu2 }
 0x4b7   : > { %1731 = vmatpush.msrb.mxu3 %v1708_v54 }
 0x4b8   : > { %2391 = vmatmul.msk.f32.vlgmr.msrb.gmra.mxu3 %vm1494_vm3, %v2390_v53  ;;  %v1782_v46 = vpop.f32.mrf.mxu1  ;;  %v2052_v53 = vld [vmem:[%s3718_s13] sm:$0x1] }
 0x4be   : > { %v1806_v56 = vpop.f32.mrf.mxu2 }
 0x4bf   : > { %1829 = vmatpush.msra.mxu3 %v1806_v56 }
 0x4c0   : > { %2401 = vmatmul.msk.f32.vlgmr.msra.gmra.mxu3 %vm1494_vm3, %v2400_v55  ;;  %v1880_v14 = vpop.f32.mrf.mxu1 }
 0x4c1   : > { %2410 = vmatpush.msk.msrb.mxu3 %vm1900_vm4, %v1892_v59 }
 0x4c3   : > { %2068 = vmatpush.msra.mxu3 %v2051_v34 }
 0x4c5   : > { %2069 = vmatpush.msra.mxu3 %v2050_v45 }
 0x4c7   : > { %2070 = vmatpush.msra.mxu3 %v2049_v47 }
 0x4c9   : > { %2071 = vmatpush.msra.mxu3 %v2048_v48 }
 0x533   : > { %v1635_v6 = vpop.f32.mrf.mxu3 }
 0x534   : > { %v1638_v32 = vadd.f32 %v1635_v6, %v1589_v8 }
 0x536   : > { %v1687_v10 = vadd.f32 %v1684_v1, %v1638_v32 }
 0x53b   : > { %v1733_v61 = vpop.f32.mrf.mxu3 }
 0x53c   : > { %v1736_v11 = vadd.f32 %v1733_v61, %v1687_v10 }
 0x53e   : > { %v1785_v12 = vadd.f32 %v1782_v46, %v1736_v11 }
 0x543   : > { %v1831_v13 = vpop.f32.mrf.mxu3 }
 0x544   : > { %v1834_v15 = vadd.f32 %v1831_v13, %v1785_v12 }
 0x546   : > { %v1883_v16 = vadd.f32 %v1880_v14, %v1834_v15 }
 0x548   : > { %v1890_v18 = vadd.f32 %v1888_v17, %v1883_v16 }
 0x54a   : > { %v1891_v19 = vmax.f32 %v1890_v18, 0.0 }
 0x54c   : > { %v1896_v20 = vrot.slane %v1891_v19, 1  ;;  %v1951_v22 = vrot.slane %v1891_v19, 2  ;;  %v1980_v23 = vrot.slane %v1891_v19, 3  ;;  %2411 = vmatmul.msk.f32.vlgmr.msrb.gmra.mxu3 %vm1897_vm5, %v1891_v19 }
 0x54e   : > { %2409 = vmatmul.msk.f32.vlgmr.msra.gmra.mxu2 %vm1897_vm5, %v1896_v20  ;;  %2414 = vmatmul.msk.f32.vlgmr.msrb.gmra.mxu0 %vm1897_vm5, %v1951_v22 }
 0x54f   : > { %2417 = vmatmul.msk.f32.vlgmr.msra.gmra.mxu1 %vm1897_vm5, %v1980_v23 }
 0x5cb   : > { %v1974_v38 = vpop.f32.mrf.mxu0 }
 0x5cc   : > { %v2003_v40 = vpop.f32.mrf.mxu1 }
 0x5cf   : > { %v1946_v35 = vpop.f32.mrf.mxu3 }
 0x5d1   : > { %v1921_v36 = vpop.f32.mrf.mxu2 }
 0x5d2   : > { %v1947_v37 = vadd.f32 %v1946_v35, %v1921_v36 }
 0x5d4   : > { %v1977_v39 = vadd.f32 %v1974_v38, %v1947_v37 }
 0x5d6   : > { %v2006_v42 = vadd.f32 %v2003_v40, %v1977_v39 }
 0x5d8   : > { %v2008_v43 = vadd.f32 %v2007_v41, %v2006_v42 }
 0x5da   : > { %v2009_v44 = vmax.f32 %v2008_v43, 0.0 }
 0x5dc   : > { %2043 = vmatmul.f32.vlgmr.msrb.gmra.mxu2 %v2009_v44 }
 0x65f   : > { %v2044_v50 = vpop.f32.mrf.mxu2 }
 0x660   : > { %v2045_v51 = vadd.f32 %v2044_v50, %v2026_v49 }
 0x662   : > { %v2047_v52 = vmax.f32 %v2045_v51, 0.0 }
 0x664   : > { %2418 = vmatmul.msk.f32.vlgmr.msra.gmra.mxu3 %vm939_vm1, %v2047_v52 }
 0x6e7   : > { %v2073_v54 = vpop.f32.mrf.mxu3 }
 0x6e8   : > { %v2074_v55 = vadd.f32 %v2073_v54, %v2052_v53 }
 0x6ea   : > { %2077 = vst.msk [vmem:[%s459_s20] sm:$0x1] %vm2076_vm6, %v2074_v55 }
 0x6eb   : > { %2490 = shalt.err (!%p2487_p3)
}
 0x6ec   : > { %2422 = dma.vmem_to_hbm [thread:$0]  (%p2641_p5), %s2090_s22, 16, %s2092_s21, %s2079_s15  }
 0x6ed PF: > { %s3732_s25 = sld [smem:[#allocation5_spill]]  ;;  %p2428_p4 = scmp.ge.s32.totalorder %s2525_s16, 2 }
 0x6ef   : > { %p2425_p7 = pnand %p2428_p4, %p2645_p6 }
 0x6f1   : > { %p2426_p8 = pneg %p2425_p7 }
 0x6f3   : > { %s2103_s20 = sand.u32 1, %s3732_s25  }
 0x6f4   : > { %s2104_s17 = scalar_lea.sflag [#allocation3], %s2103_s20 }
 0x6f5   : > { %2508 = dma.done.wait (%p2426_p8), %s2104_s17, 16  }
 0x6f6   : > { %2510 = vsyncadd (%p2426_p8), %s2104_s17, 4294967280  ;;  %s3734_s16 = sld [smem:[#allocation7_spill]]  ;;  %s3737_s29 = smov %s2517_s30 }
 0x6f7   : > { %s3735_s19 = sld [smem:[#allocation6_spill]] }
 0x6f8   : > { %s3736_s15 = sld [smem:[#allocation8_spill]] }
 0x6fc   : > { %p24_p9 = scmp.ge.s32.totalorder %s3734_s16, 4  }
 0x6fd   : > { %s3738_s30 = smov %s3735_s19 }
 0x6fe   :  { %26 = sbr.rel (!%p24_p9) target bundleno = 3 (0x3), region = 149 }
 0x703   :  { %2109 = vsyncpa [#allocation3], 1 }
 0x704   :  { %2111 = vsyncpa [#allocation3 + $0x1], 1 }

</bundles_post_ra>
